<compile_context>
chip_gen: v6e
topology: v6e:2x2x1
jax: 0.10.0
libtpu: 0.0.40
codegen_flags: <defaults>
</compile_context>

<pallas_src>
import functools

import jax
import jax.numpy as jnp
from jax.experimental import pallas as pl
from jax.experimental.pallas import tpu as pltpu


# ---------------------------------------------------------------------------
# Small helpers (host/prep side)
# ---------------------------------------------------------------------------
def _unpack_nibbles(packed):
    """int32 [R, W] -> int32 [R, 8*W] where col (w*8 + j) = nibble j of word w."""
    r, w = packed.shape
    nibs = jnp.stack(
        [jnp.bitwise_and(jnp.right_shift(packed, 4 * j), 0xF) for j in range(8)],
        axis=-1,
    )
    return nibs.reshape(r, w * 8)


def _pack_nibbles(nibs):
    """int32 [R, W*8] with values in [0,16) -> packed int32 [R, W] (GPTQ order)."""
    r, k = nibs.shape
    w = k // 8
    n3 = nibs.reshape(r, w, 8).astype(jnp.uint32)
    packed = functools.reduce(
        jnp.bitwise_or,
        [jnp.left_shift(n3[:, :, j], 4 * j) for j in range(8)],
    )
    return jax.lax.bitcast_convert_type(packed, jnp.int32)


# ---------------------------------------------------------------------------
# Pallas kernel
# ---------------------------------------------------------------------------
def _gptq_linear_kernel(x_ref, qw_ref, s_ref, nzs_ref, gmat_ref, b_ref,
                        o_ref, acc_ref, *, k8, gpp, group_size, compute_dtype):
    # x_ref    : [B, block_k]      f32  activation K-block (unpermuted)
    # qw_ref   : [k8, TN]          i32  repacked 4-bit weights (K-major layout)
    # s_ref    : [8, gpp, TN]      f32  per-group scales, part-major view
    # nzs_ref  : [g_blk, TN]       f32  -(zero * scale) per group
    # gmat_ref : [block_k, g_blk]  f32  one-hot k -> group matrix (block const)
    # b_ref    : [1, TN]           f32  bias
    # o_ref    : [B, TN]                output tile (written at last K block)
    # acc_ref  : [B, TN]           f32  accumulator scratch (resident across K)
    kb = pl.program_id(1)

    @pl.when(kb == 0)
    def _init():
        acc_ref[...] = jnp.zeros_like(acc_ref)

    x = x_ref[...]                                                # [B, block_k]

    # Zero-point correction: acc -= (per-group sums of x) @ (zero * scale).
    x_gsum = jax.lax.dot_general(
        x, gmat_ref[...],
        dimension_numbers=(((1,), (0,)), ((), ())),
        preferred_element_type=jnp.float32)                       # [B, g_blk]
    acc_ref[...] += jax.lax.dot_general(
        x_gsum, nzs_ref[...],
        dimension_numbers=(((1,), (0,)), ((), ())),
        preferred_element_type=jnp.float32)                       # [B, TN]

    qw = qw_ref[...]                                              # [k8, TN] i32
    tn = qw.shape[1]
    x_c = x.astype(compute_dtype)

    # Nibble j of packed row w corresponds (by the offline repack) to the
    # contraction index k = j*k8 + w within this K block, so each nibble part
    # is already in canonical [k8, TN] layout -> one partial matmul per part.
    for j in range(8):
        shifted = qw if j == 0 else jnp.right_shift(qw, 4 * j)
        nib = jnp.bitwise_and(shifted, 0xF).astype(compute_dtype)    # [k8, TN]
        s_j = s_ref[j].astype(compute_dtype).reshape(gpp, 1, tn)     # [gpp,1,TN]
        w_j = (nib.reshape(gpp, group_size, tn) * s_j).reshape(k8, tn)
        acc_ref[...] += jax.lax.dot_general(
            x_c[:, j * k8:(j + 1) * k8], w_j,
            dimension_numbers=(((1,), (0,)), ((), ())),
            preferred_element_type=jnp.float32)

    @pl.when(kb == pl.num_programs(1) - 1)
    def _finalize():
        o_ref[...] = (acc_ref[...] + b_ref[...]).astype(o_ref.dtype)


# ---------------------------------------------------------------------------
# Offline parameter preparation (one-time, weights are static)
# ---------------------------------------------------------------------------
def prepare_gptq_params(qweight, qzeros, scales, bias=None, *, group_size=32,
                        block_k=2048, compute_dtype=jnp.float32):
    N, K8 = qweight.shape
    K = 8 * K8
    block_k = min(block_k, K)
    assert K % block_k == 0, "K must be a multiple of block_k"
    assert block_k % (8 * group_size) == 0, "block_k must be a multiple of 8*group_size"
    assert block_k % 128 == 0, "block_k must be a multiple of 128 lanes"
    assert group_size % 8 == 0, "group_size must be a multiple of 8"
    KB = K // block_k
    k8 = block_k // 8
    g_blk = block_k // group_size
    gpp = k8 // group_size
    G = K // group_size

    # Unpack the original GPTQ packing (k = word*8 + nibble), transpose to
    # [K, N], then repack nibble-major *per K block* so the kernel's per-part
    # unpack reproduces the natural K order with no activation permute.
    nibs = _unpack_nibbles(qweight)                                   # [N, K]
    nibs_t = nibs.T.reshape(KB, 8, k8, N).astype(jnp.uint32)
    packed = functools.reduce(
        jnp.bitwise_or,
        [jnp.left_shift(nibs_t[:, j], 4 * j) for j in range(8)],
    )                                                                 # [KB, k8, N]
    qweight_t = jax.lax.bitcast_convert_type(packed, jnp.int32).reshape(K8, N)

    zeros_t = _unpack_nibbles(qzeros)[:, :G].T.astype(jnp.float32)    # [G, N]
    # TODO(synk): AutoGPTQ stores (zero - 1); add +1 to zeros_t for real ckpts.
    scales_t = scales.T.astype(jnp.float32)                           # [G, N]
    # Part-major view: row (kb*8 + j, p) is group kb*g_blk + j*gpp + p.
    scales_r = scales_t.reshape(KB * 8, gpp, N)                       # [KB*8,gpp,N]
    neg_zs_t = -(zeros_t * scales_t)                                  # [G, N]

    # One-hot k -> group matrix (identical for every block); used for the
    # per-block group sums of x on the MXU.
    gmat = (jnp.arange(block_k)[:, None] // group_size ==
            jnp.arange(g_blk)[None, :]).astype(jnp.float32)           # [block_k,g_blk]

    bias2d = (jnp.zeros((1, N), jnp.float32) if bias is None
              else bias.reshape(1, N).astype(jnp.float32))

    return dict(qweight_t=qweight_t, scales_r=scales_r, neg_zs_t=neg_zs_t,
                gmat=gmat, bias=bias2d, group_size=group_size, block_k=block_k,
                compute_dtype=compute_dtype, in_features=K, out_features=N)


# ---------------------------------------------------------------------------
# Forward call
# ---------------------------------------------------------------------------
def gptq_linear(x, params, *, tile_n=512):
    B, K = x.shape
    N = params["out_features"]
    assert K == params["in_features"]
    block_k = params["block_k"]
    group_size = params["group_size"]
    compute_dtype = params["compute_dtype"]
    tile_n = min(tile_n, N)
    assert N % tile_n == 0
    assert tile_n % 128 == 0 or tile_n == N

    k8 = block_k // 8
    g_blk = block_k // group_size
    gpp = k8 // group_size
    grid = (N // tile_n, K // block_k)          # reduction (K) axis last

    kernel = functools.partial(_gptq_linear_kernel, k8=k8, gpp=gpp,
                               group_size=group_size,
                               compute_dtype=compute_dtype)

    # TODO(synk): for prefill-sized B, switch x to a K-resident BlockSpec to
    #             avoid re-streaming the activations once per N tile.
    return pl.pallas_call(
        kernel,
        out_shape=jax.ShapeDtypeStruct((B, N), x.dtype),
        grid_spec=pltpu.PrefetchScalarGridSpec(
            num_scalar_prefetch=0,
            grid=grid,
            in_specs=[
                pl.BlockSpec((B, block_k), lambda i, kb: (0, kb)),        # x
                pl.BlockSpec((k8, tile_n), lambda i, kb: (kb, i)),        # packed w
                pl.BlockSpec((8, gpp, tile_n), lambda i, kb: (kb, 0, i)), # scales
                pl.BlockSpec((g_blk, tile_n), lambda i, kb: (kb, i)),     # -(z*s)
                pl.BlockSpec((block_k, g_blk), lambda i, kb: (0, 0)),     # group mat
                pl.BlockSpec((1, tile_n), lambda i, kb: (0, i)),          # bias
            ],
            out_specs=pl.BlockSpec((B, tile_n), lambda i, kb: (0, i)),
            scratch_shapes=[pltpu.VMEM((B, tile_n), jnp.float32)],
        ),
        compiler_params=pltpu.CompilerParams(
            dimension_semantics=("parallel", "arbitrary"),
        ),
    )(x, params["qweight_t"], params["scales_r"], params["neg_zs_t"],
      params["gmat"], params["bias"])


# ---------------------------------------------------------------------------
# Pure-JAX reference (mirrors dequantize_weight + matmul + bias, f32).
# ---------------------------------------------------------------------------
def gptq_linear_ref(x, qweight, qzeros, scales, bias, *, group_size=32):
    N, K8 = qweight.shape
    K = K8 * 8
    G = K // group_size
    w_nibs = _unpack_nibbles(qweight).astype(jnp.float32)               # [N, K]
    zeros = _unpack_nibbles(qzeros)[:, :G].astype(jnp.float32)          # [N, G]
    g_idx = jnp.arange(K) // group_size
    weight = (w_nibs - zeros[:, g_idx]) * scales[:, g_idx]              # [N, K]
    out = x @ weight.T
    if bias is not None:
        out = out + bias[None, :]
    return out


# ---------------------------------------------------------------------------
# Deterministic synthetic parameters & test.
# ---------------------------------------------------------------------------
if __name__ == "__main__":
    B, K, N = 8, 2048, 256          # batch, in_features, out_features
    group_size = 32
    G = K // group_size             # 64

    key = jax.random.PRNGKey(0)
    k_x, k_w, k_z, k_s, k_b = jax.random.split(key, 5)

    x = jax.random.normal(k_x, (B, K), dtype=jnp.float32)

    w_nibs = jax.random.randint(k_w, (N, K), 0, 16, dtype=jnp.int32)
    qweight = _pack_nibbles(w_nibs)                                     # [N, K//8] int32

    z_nibs = jax.random.randint(k_z, (N, G), 0, 16, dtype=jnp.int32)
    qzeros = _pack_nibbles(z_nibs)                                      # [N, G//8] int32

    scales = jax.random.uniform(k_s, (N, G), minval=0.01, maxval=0.1,
                                dtype=jnp.float32)
    bias = jax.random.normal(k_b, (N,), dtype=jnp.float32)

    # One-time offline repack (weights are static in a real model).
    # block_k=1024 -> 2 K blocks (exercises the accumulator path) and
    # k8 = 128 (lane-aligned x part slices).
    params = prepare_gptq_params(qweight, qzeros, scales, bias,
                                 group_size=group_size, block_k=1024,
                                 compute_dtype=jnp.float32)

    out = gptq_linear(x, params, tile_n=128)
    out = jax.block_until_ready(out)

    ref = gptq_linear_ref(x, qweight, qzeros, scales, bias, group_size=group_size)
    assert out.shape == (B, N)

    rel = float(jnp.linalg.norm(out - ref) / jnp.linalg.norm(ref))
    max_err = float(jnp.max(jnp.abs(out - ref)))
    ref_scale = float(jnp.maximum(jnp.std(ref), 1.0))
    assert rel < 1e-2, f"relative Frobenius error too large: {rel}"
    assert max_err < 0.05 * ref_scale, f"max abs error too large: {max_err}"

    print("KERNEL_OK")
</pallas_src>

<mosaic_0001>
module attributes {stable_mosaic.version = 11 : i64} {
  func.func @_gptq_linear_kernel(%arg0: i32, %arg1: i32, %arg2: memref<8x1024xf32, #tpu.memory_space<vmem>>, %arg3: memref<128x128xi32, #tpu.memory_space<vmem>>, %arg4: memref<8x4x128xf32, #tpu.memory_space<vmem>>, %arg5: memref<32x128xf32, #tpu.memory_space<vmem>>, %arg6: memref<1024x32xf32, #tpu.memory_space<vmem>>, %arg7: memref<1x128xf32, #tpu.memory_space<vmem>>, %arg8: memref<8x128xf32, #tpu.memory_space<vmem>>, %arg9: memref<8x128xf32, #tpu.memory_space<vmem>>) attributes {dimension_semantics = [#tpu.dimension_semantics<parallel>, #tpu.dimension_semantics<arbitrary>], iteration_bounds = array<i64: 2, 2>, scalar_prefetch = 0 : i64, scratch_operands = 1 : i64, tpu.core_type = #tpu.core_type<tc>, window_params = [{transform_indices = @transform_0, window_bounds = array<i64: 8, 1024>}, {transform_indices = @transform_1, window_bounds = array<i64: 128, 128>}, {transform_indices = @transform_2, window_bounds = array<i64: 8, 4, 128>}, {transform_indices = @transform_3, window_bounds = array<i64: 32, 128>}, {pipeline_mode = #tpu.pipeline_mode<synchronous>, transform_indices = @transform_4, window_bounds = array<i64: 1024, 32>}, {transform_indices = @transform_5, window_bounds = array<i64: 1, 128>}, {transform_indices = @transform_6, window_bounds = array<i64: 8, 128>}]} {
    %c0_i32 = arith.constant 0 : i32
    %0 = arith.cmpi eq, %arg1, %c0_i32 : i32
    %1 = arith.extui %0 : i1 to i32
    %c0_i32_0 = arith.constant 0 : i32
    %2 = arith.cmpi ne, %1, %c0_i32_0 : i32
    scf.if %2 {
      %cst_78 = arith.constant 0.000000e+00 : f32
      %149 = vector.broadcast %cst_78 : f32 to vector<8x128xf32>
      %c0_79 = arith.constant 0 : index
      %c0_80 = arith.constant 0 : index
      %150 = vector.load %arg9[%c0_79, %c0_80] : memref<8x128xf32, #tpu.memory_space<vmem>>, vector<8x128xf32>
      tpu.vector_store %arg9[%c0_79, %c0_80], %149 {strides = array<i32>} : memref<8x128xf32, #tpu.memory_space<vmem>>, vector<8x128xf32>,
    } else {
    }
    %c0 = arith.constant 0 : index
    %c0_1 = arith.constant 0 : index
    %3 = vector.load %arg2[%c0, %c0_1] : memref<8x1024xf32, #tpu.memory_space<vmem>>, vector<8x1024xf32>
    %c0_2 = arith.constant 0 : index
    %c0_3 = arith.constant 0 : index
    %4 = vector.load %arg6[%c0_2, %c0_3] : memref<1024x32xf32, #tpu.memory_space<vmem>>, vector<1024x32xf32>
    %cst = arith.constant dense<0.000000e+00> : vector<8x32xf32>
    %5 = tpu.matmul %3, %4, %cst {dimension_numbers = #tpu.dot_dimension_numbers<[1], [0], [0], [1], [0, 0, 1, 1], [], []>} : vector<8x1024xf32>, vector<1024x32xf32>, vector<8x32xf32> -> vector<8x32xf32>
    %c0_4 = arith.constant 0 : index
    %c0_5 = arith.constant 0 : index
    %6 = vector.load %arg9[%c0_4, %c0_5] : memref<8x128xf32, #tpu.memory_space<vmem>>, vector<8x128xf32>
    %c0_6 = arith.constant 0 : index
    %c0_7 = arith.constant 0 : index
    %7 = vector.load %arg5[%c0_6, %c0_7] : memref<32x128xf32, #tpu.memory_space<vmem>>, vector<32x128xf32>
    %cst_8 = arith.constant dense<0.000000e+00> : vector<8x128xf32>
    %8 = tpu.matmul %5, %7, %cst_8 {dimension_numbers = #tpu.dot_dimension_numbers<[1], [0], [0], [1], [0, 0, 1, 1], [], []>} : vector<8x32xf32>, vector<32x128xf32>, vector<8x128xf32> -> vector<8x128xf32>
    %9 = arith.addf %6, %8 : vector<8x128xf32>
    %c0_9 = arith.constant 0 : index
    %c0_10 = arith.constant 0 : index
    %10 = vector.load %arg9[%c0_9, %c0_10] : memref<8x128xf32, #tpu.memory_space<vmem>>, vector<8x128xf32>
    tpu.vector_store %arg9[%c0_9, %c0_10], %9 {strides = array<i32>} : memref<8x128xf32, #tpu.memory_space<vmem>>, vector<8x128xf32>,
    %c0_11 = arith.constant 0 : index
    %c0_12 = arith.constant 0 : index
    %11 = vector.load %arg3[%c0_11, %c0_12] : memref<128x128xi32, #tpu.memory_space<vmem>>, vector<128x128xi32>
    %c15_i32 = arith.constant 15 : i32
    %12 = vector.broadcast %c15_i32 : i32 to vector<128x128xi32>
    %13 = arith.andi %11, %12 : vector<128x128xi32>
    %14 = arith.sitofp %13 : vector<128x128xi32> to vector<128x128xf32>
    %c0_13 = arith.constant 0 : index
    %c0_14 = arith.constant 0 : index
    %c0_15 = arith.constant 0 : index
    %15 = vector.load %arg4[%c0_13, %c0_14, %c0_15] : memref<8x4x128xf32, #tpu.memory_space<vmem>>, vector<1x4x128xf32>
    %16 = vector.shape_cast %15 : vector<1x4x128xf32> to vector<4x128xf32>
    %17 = vector.shape_cast %16 : vector<4x128xf32> to vector<4x1x128xf32>
    %18 = vector.shape_cast %14 : vector<128x128xf32> to vector<4x32x128xf32>
    %19 = vector.broadcast %17 : vector<4x1x128xf32> to vector<4x32x128xf32>
    %20 = arith.mulf %18, %19 : vector<4x32x128xf32>
    %21 = vector.shape_cast %20 : vector<4x32x128xf32> to vector<128x128xf32>
    %c0_16 = arith.constant 0 : index
    %c0_17 = arith.constant 0 : index
    %22 = vector.load %arg9[%c0_16, %c0_17] : memref<8x128xf32, #tpu.memory_space<vmem>>, vector<8x128xf32>
    %23 = vector.extract_strided_slice %3 {offsets = [0, 0], sizes = [8, 128], strides = [1, 1]} : vector<8x1024xf32> to vector<8x128xf32>
    %cst_18 = arith.constant dense<0.000000e+00> : vector<8x128xf32>
    %24 = tpu.matmul %23, %21, %cst_18 {dimension_numbers = #tpu.dot_dimension_numbers<[1], [0], [0], [1], [0, 0, 1, 1], [], []>} : vector<8x128xf32>, vector<128x128xf32>, vector<8x128xf32> -> vector<8x128xf32>
    %25 = arith.addf %22, %24 : vector<8x128xf32>
    %c0_19 = arith.constant 0 : index
    %c0_20 = arith.constant 0 : index
    %26 = vector.load %arg9[%c0_19, %c0_20] : memref<8x128xf32, #tpu.memory_space<vmem>>, vector<8x128xf32>
    tpu.vector_store %arg9[%c0_19, %c0_20], %25 {strides = array<i32>} : memref<8x128xf32, #tpu.memory_space<vmem>>, vector<8x128xf32>,
    %c4_i32 = arith.constant 4 : i32
    %27 = vector.broadcast %c4_i32 : i32 to vector<128x128xi32>
    %28 = arith.shrsi %11, %27 : vector<128x128xi32>
    %c15_i32_21 = arith.constant 15 : i32
    %29 = vector.broadcast %c15_i32_21 : i32 to vector<128x128xi32>
    %30 = arith.andi %28, %29 : vector<128x128xi32>
    %31 = arith.sitofp %30 : vector<128x128xi32> to vector<128x128xf32>
    %c1 = arith.constant 1 : index
    %c0_22 = arith.constant 0 : index
    %c0_23 = arith.constant 0 : index
    %32 = vector.load %arg4[%c1, %c0_22, %c0_23] : memref<8x4x128xf32, #tpu.memory_space<vmem>>, vector<1x4x128xf32>
    %33 = vector.shape_cast %32 : vector<1x4x128xf32> to vector<4x128xf32>
    %34 = vector.shape_cast %33 : vector<4x128xf32> to vector<4x1x128xf32>
    %35 = vector.shape_cast %31 : vector<128x128xf32> to vector<4x32x128xf32>
    %36 = vector.broadcast %34 : vector<4x1x128xf32> to vector<4x32x128xf32>
    %37 = arith.mulf %35, %36 : vector<4x32x128xf32>
    %38 = vector.shape_cast %37 : vector<4x32x128xf32> to vector<128x128xf32>
    %c0_24 = arith.constant 0 : index
    %c0_25 = arith.constant 0 : index
    %39 = vector.load %arg9[%c0_24, %c0_25] : memref<8x128xf32, #tpu.memory_space<vmem>>, vector<8x128xf32>
    %40 = vector.extract_strided_slice %3 {offsets = [0, 128], sizes = [8, 128], strides = [1, 1]} : vector<8x1024xf32> to vector<8x128xf32>
    %cst_26 = arith.constant dense<0.000000e+00> : vector<8x128xf32>
    %41 = tpu.matmul %40, %38, %cst_26 {dimension_numbers = #tpu.dot_dimension_numbers<[1], [0], [0], [1], [0, 0, 1, 1], [], []>} : vector<8x128xf32>, vector<128x128xf32>, vector<8x128xf32> -> vector<8x128xf32>
    %42 = arith.addf %39, %41 : vector<8x128xf32>
    %c0_27 = arith.constant 0 : index
    %c0_28 = arith.constant 0 : index
    %43 = vector.load %arg9[%c0_27, %c0_28] : memref<8x128xf32, #tpu.memory_space<vmem>>, vector<8x128xf32>
    tpu.vector_store %arg9[%c0_27, %c0_28], %42 {strides = array<i32>} : memref<8x128xf32, #tpu.memory_space<vmem>>, vector<8x128xf32>,
    %c8_i32 = arith.constant 8 : i32
    %44 = vector.broadcast %c8_i32 : i32 to vector<128x128xi32>
    %45 = arith.shrsi %11, %44 : vector<128x128xi32>
    %c15_i32_29 = arith.constant 15 : i32
    %46 = vector.broadcast %c15_i32_29 : i32 to vector<128x128xi32>
    %47 = arith.andi %45, %46 : vector<128x128xi32>
    %48 = arith.sitofp %47 : vector<128x128xi32> to vector<128x128xf32>
    %c2 = arith.constant 2 : index
    %c0_30 = arith.constant 0 : index
    %c0_31 = arith.constant 0 : index
    %49 = vector.load %arg4[%c2, %c0_30, %c0_31] : memref<8x4x128xf32, #tpu.memory_space<vmem>>, vector<1x4x128xf32>
    %50 = vector.shape_cast %49 : vector<1x4x128xf32> to vector<4x128xf32>
    %51 = vector.shape_cast %50 : vector<4x128xf32> to vector<4x1x128xf32>
    %52 = vector.shape_cast %48 : vector<128x128xf32> to vector<4x32x128xf32>
    %53 = vector.broadcast %51 : vector<4x1x128xf32> to vector<4x32x128xf32>
    %54 = arith.mulf %52, %53 : vector<4x32x128xf32>
    %55 = vector.shape_cast %54 : vector<4x32x128xf32> to vector<128x128xf32>
    %c0_32 = arith.constant 0 : index
    %c0_33 = arith.constant 0 : index
    %56 = vector.load %arg9[%c0_32, %c0_33] : memref<8x128xf32, #tpu.memory_space<vmem>>, vector<8x128xf32>
    %57 = vector.extract_strided_slice %3 {offsets = [0, 256], sizes = [8, 128], strides = [1, 1]} : vector<8x1024xf32> to vector<8x128xf32>
    %cst_34 = arith.constant dense<0.000000e+00> : vector<8x128xf32>
    %58 = tpu.matmul %57, %55, %cst_34 {dimension_numbers = #tpu.dot_dimension_numbers<[1], [0], [0], [1], [0, 0, 1, 1], [], []>} : vector<8x128xf32>, vector<128x128xf32>, vector<8x128xf32> -> vector<8x128xf32>
    %59 = arith.addf %56, %58 : vector<8x128xf32>
    %c0_35 = arith.constant 0 : index
    %c0_36 = arith.constant 0 : index
    %60 = vector.load %arg9[%c0_35, %c0_36] : memref<8x128xf32, #tpu.memory_space<vmem>>, vector<8x128xf32>
    tpu.vector_store %arg9[%c0_35, %c0_36], %59 {strides = array<i32>} : memref<8x128xf32, #tpu.memory_space<vmem>>, vector<8x128xf32>,
    %c12_i32 = arith.constant 12 : i32
    %61 = vector.broadcast %c12_i32 : i32 to vector<128x128xi32>
    %62 = arith.shrsi %11, %61 : vector<128x128xi32>
    %c15_i32_37 = arith.constant 15 : i32
    %63 = vector.broadcast %c15_i32_37 : i32 to vector<128x128xi32>
    %64 = arith.andi %62, %63 : vector<128x128xi32>
    %65 = arith.sitofp %64 : vector<128x128xi32> to vector<128x128xf32>
    %c3 = arith.constant 3 : index
    %c0_38 = arith.constant 0 : index
    %c0_39 = arith.constant 0 : index
    %66 = vector.load %arg4[%c3, %c0_38, %c0_39] : memref<8x4x128xf32, #tpu.memory_space<vmem>>, vector<1x4x128xf32>
    %67 = vector.shape_cast %66 : vector<1x4x128xf32> to vector<4x128xf32>
    %68 = vector.shape_cast %67 : vector<4x128xf32> to vector<4x1x128xf32>
    %69 = vector.shape_cast %65 : vector<128x128xf32> to vector<4x32x128xf32>
    %70 = vector.broadcast %68 : vector<4x1x128xf32> to vector<4x32x128xf32>
    %71 = arith.mulf %69, %70 : vector<4x32x128xf32>
    %72 = vector.shape_cast %71 : vector<4x32x128xf32> to vector<128x128xf32>
    %c0_40 = arith.constant 0 : index
    %c0_41 = arith.constant 0 : index
    %73 = vector.load %arg9[%c0_40, %c0_41] : memref<8x128xf32, #tpu.memory_space<vmem>>, vector<8x128xf32>
    %74 = vector.extract_strided_slice %3 {offsets = [0, 384], sizes = [8, 128], strides = [1, 1]} : vector<8x1024xf32> to vector<8x128xf32>
    %cst_42 = arith.constant dense<0.000000e+00> : vector<8x128xf32>
    %75 = tpu.matmul %74, %72, %cst_42 {dimension_numbers = #tpu.dot_dimension_numbers<[1], [0], [0], [1], [0, 0, 1, 1], [], []>} : vector<8x128xf32>, vector<128x128xf32>, vector<8x128xf32> -> vector<8x128xf32>
    %76 = arith.addf %73, %75 : vector<8x128xf32>
    %c0_43 = arith.constant 0 : index
    %c0_44 = arith.constant 0 : index
    %77 = vector.load %arg9[%c0_43, %c0_44] : memref<8x128xf32, #tpu.memory_space<vmem>>, vector<8x128xf32>
    tpu.vector_store %arg9[%c0_43, %c0_44], %76 {strides = array<i32>} : memref<8x128xf32, #tpu.memory_space<vmem>>, vector<8x128xf32>,
    %c16_i32 = arith.constant 16 : i32
    %78 = vector.broadcast %c16_i32 : i32 to vector<128x128xi32>
    %79 = arith.shrsi %11, %78 : vector<128x128xi32>
    %c15_i32_45 = arith.constant 15 : i32
    %80 = vector.broadcast %c15_i32_45 : i32 to vector<128x128xi32>
    %81 = arith.andi %79, %80 : vector<128x128xi32>
    %82 = arith.sitofp %81 : vector<128x128xi32> to vector<128x128xf32>
    %c4 = arith.constant 4 : index
    %c0_46 = arith.constant 0 : index
    %c0_47 = arith.constant 0 : index
    %83 = vector.load %arg4[%c4, %c0_46, %c0_47] : memref<8x4x128xf32, #tpu.memory_space<vmem>>, vector<1x4x128xf32>
    %84 = vector.shape_cast %83 : vector<1x4x128xf32> to vector<4x128xf32>
    %85 = vector.shape_cast %84 : vector<4x128xf32> to vector<4x1x128xf32>
    %86 = vector.shape_cast %82 : vector<128x128xf32> to vector<4x32x128xf32>
    %87 = vector.broadcast %85 : vector<4x1x128xf32> to vector<4x32x128xf32>
    %88 = arith.mulf %86, %87 : vector<4x32x128xf32>
    %89 = vector.shape_cast %88 : vector<4x32x128xf32> to vector<128x128xf32>
    %c0_48 = arith.constant 0 : index
    %c0_49 = arith.constant 0 : index
    %90 = vector.load %arg9[%c0_48, %c0_49] : memref<8x128xf32, #tpu.memory_space<vmem>>, vector<8x128xf32>
    %91 = vector.extract_strided_slice %3 {offsets = [0, 512], sizes = [8, 128], strides = [1, 1]} : vector<8x1024xf32> to vector<8x128xf32>
    %cst_50 = arith.constant dense<0.000000e+00> : vector<8x128xf32>
    %92 = tpu.matmul %91, %89, %cst_50 {dimension_numbers = #tpu.dot_dimension_numbers<[1], [0], [0], [1], [0, 0, 1, 1], [], []>} : vector<8x128xf32>, vector<128x128xf32>, vector<8x128xf32> -> vector<8x128xf32>
    %93 = arith.addf %90, %92 : vector<8x128xf32>
    %c0_51 = arith.constant 0 : index
    %c0_52 = arith.constant 0 : index
    %94 = vector.load %arg9[%c0_51, %c0_52] : memref<8x128xf32, #tpu.memory_space<vmem>>, vector<8x128xf32>
    tpu.vector_store %arg9[%c0_51, %c0_52], %93 {strides = array<i32>} : memref<8x128xf32, #tpu.memory_space<vmem>>, vector<8x128xf32>,
    %c20_i32 = arith.constant 20 : i32
    %95 = vector.broadcast %c20_i32 : i32 to vector<128x128xi32>
    %96 = arith.shrsi %11, %95 : vector<128x128xi32>
    %c15_i32_53 = arith.constant 15 : i32
    %97 = vector.broadcast %c15_i32_53 : i32 to vector<128x128xi32>
    %98 = arith.andi %96, %97 : vector<128x128xi32>
    %99 = arith.sitofp %98 : vector<128x128xi32> to vector<128x128xf32>
    %c5 = arith.constant 5 : index
    %c0_54 = arith.constant 0 : index
    %c0_55 = arith.constant 0 : index
    %100 = vector.load %arg4[%c5, %c0_54, %c0_55] : memref<8x4x128xf32, #tpu.memory_space<vmem>>, vector<1x4x128xf32>
    %101 = vector.shape_cast %100 : vector<1x4x128xf32> to vector<4x128xf32>
    %102 = vector.shape_cast %101 : vector<4x128xf32> to vector<4x1x128xf32>
    %103 = vector.shape_cast %99 : vector<128x128xf32> to vector<4x32x128xf32>
    %104 = vector.broadcast %102 : vector<4x1x128xf32> to vector<4x32x128xf32>
    %105 = arith.mulf %103, %104 : vector<4x32x128xf32>
    %106 = vector.shape_cast %105 : vector<4x32x128xf32> to vector<128x128xf32>
    %c0_56 = arith.constant 0 : index
    %c0_57 = arith.constant 0 : index
    %107 = vector.load %arg9[%c0_56, %c0_57] : memref<8x128xf32, #tpu.memory_space<vmem>>, vector<8x128xf32>
    %108 = vector.extract_strided_slice %3 {offsets = [0, 640], sizes = [8, 128], strides = [1, 1]} : vector<8x1024xf32> to vector<8x128xf32>
    %cst_58 = arith.constant dense<0.000000e+00> : vector<8x128xf32>
    %109 = tpu.matmul %108, %106, %cst_58 {dimension_numbers = #tpu.dot_dimension_numbers<[1], [0], [0], [1], [0, 0, 1, 1], [], []>} : vector<8x128xf32>, vector<128x128xf32>, vector<8x128xf32> -> vector<8x128xf32>
    %110 = arith.addf %107, %109 : vector<8x128xf32>
    %c0_59 = arith.constant 0 : index
    %c0_60 = arith.constant 0 : index
    %111 = vector.load %arg9[%c0_59, %c0_60] : memref<8x128xf32, #tpu.memory_space<vmem>>, vector<8x128xf32>
    tpu.vector_store %arg9[%c0_59, %c0_60], %110 {strides = array<i32>} : memref<8x128xf32, #tpu.memory_space<vmem>>, vector<8x128xf32>,
    %c24_i32 = arith.constant 24 : i32
    %112 = vector.broadcast %c24_i32 : i32 to vector<128x128xi32>
    %113 = arith.shrsi %11, %112 : vector<128x128xi32>
    %c15_i32_61 = arith.constant 15 : i32
    %114 = vector.broadcast %c15_i32_61 : i32 to vector<128x128xi32>
    %115 = arith.andi %113, %114 : vector<128x128xi32>
    %116 = arith.sitofp %115 : vector<128x128xi32> to vector<128x128xf32>
    %c6 = arith.constant 6 : index
    %c0_62 = arith.constant 0 : index
    %c0_63 = arith.constant 0 : index
    %117 = vector.load %arg4[%c6, %c0_62, %c0_63] : memref<8x4x128xf32, #tpu.memory_space<vmem>>, vector<1x4x128xf32>
    %118 = vector.shape_cast %117 : vector<1x4x128xf32> to vector<4x128xf32>
    %119 = vector.shape_cast %118 : vector<4x128xf32> to vector<4x1x128xf32>
    %120 = vector.shape_cast %116 : vector<128x128xf32> to vector<4x32x128xf32>
    %121 = vector.broadcast %119 : vector<4x1x128xf32> to vector<4x32x128xf32>
    %122 = arith.mulf %120, %121 : vector<4x32x128xf32>
    %123 = vector.shape_cast %122 : vector<4x32x128xf32> to vector<128x128xf32>
    %c0_64 = arith.constant 0 : index
    %c0_65 = arith.constant 0 : index
    %124 = vector.load %arg9[%c0_64, %c0_65] : memref<8x128xf32, #tpu.memory_space<vmem>>, vector<8x128xf32>
    %125 = vector.extract_strided_slice %3 {offsets = [0, 768], sizes = [8, 128], strides = [1, 1]} : vector<8x1024xf32> to vector<8x128xf32>
    %cst_66 = arith.constant dense<0.000000e+00> : vector<8x128xf32>
    %126 = tpu.matmul %125, %123, %cst_66 {dimension_numbers = #tpu.dot_dimension_numbers<[1], [0], [0], [1], [0, 0, 1, 1], [], []>} : vector<8x128xf32>, vector<128x128xf32>, vector<8x128xf32> -> vector<8x128xf32>
    %127 = arith.addf %124, %126 : vector<8x128xf32>
    %c0_67 = arith.constant 0 : index
    %c0_68 = arith.constant 0 : index
    %128 = vector.load %arg9[%c0_67, %c0_68] : memref<8x128xf32, #tpu.memory_space<vmem>>, vector<8x128xf32>
    tpu.vector_store %arg9[%c0_67, %c0_68], %127 {strides = array<i32>} : memref<8x128xf32, #tpu.memory_space<vmem>>, vector<8x128xf32>,
    %c28_i32 = arith.constant 28 : i32
    %129 = vector.broadcast %c28_i32 : i32 to vector<128x128xi32>
    %130 = arith.shrsi %11, %129 : vector<128x128xi32>
    %c15_i32_69 = arith.constant 15 : i32
    %131 = vector.broadcast %c15_i32_69 : i32 to vector<128x128xi32>
    %132 = arith.andi %130, %131 : vector<128x128xi32>
    %133 = arith.sitofp %132 : vector<128x128xi32> to vector<128x128xf32>
    %c7 = arith.constant 7 : index
    %c0_70 = arith.constant 0 : index
    %c0_71 = arith.constant 0 : index
    %134 = vector.load %arg4[%c7, %c0_70, %c0_71] : memref<8x4x128xf32, #tpu.memory_space<vmem>>, vector<1x4x128xf32>
    %135 = vector.shape_cast %134 : vector<1x4x128xf32> to vector<4x128xf32>
    %136 = vector.shape_cast %135 : vector<4x128xf32> to vector<4x1x128xf32>
    %137 = vector.shape_cast %133 : vector<128x128xf32> to vector<4x32x128xf32>
    %138 = vector.broadcast %136 : vector<4x1x128xf32> to vector<4x32x128xf32>
    %139 = arith.mulf %137, %138 : vector<4x32x128xf32>
    %140 = vector.shape_cast %139 : vector<4x32x128xf32> to vector<128x128xf32>
    %c0_72 = arith.constant 0 : index
    %c0_73 = arith.constant 0 : index
    %141 = vector.load %arg9[%c0_72, %c0_73] : memref<8x128xf32, #tpu.memory_space<vmem>>, vector<8x128xf32>
    %142 = vector.extract_strided_slice %3 {offsets = [0, 896], sizes = [8, 128], strides = [1, 1]} : vector<8x1024xf32> to vector<8x128xf32>
    %cst_74 = arith.constant dense<0.000000e+00> : vector<8x128xf32>
    %143 = tpu.matmul %142, %140, %cst_74 {dimension_numbers = #tpu.dot_dimension_numbers<[1], [0], [0], [1], [0, 0, 1, 1], [], []>} : vector<8x128xf32>, vector<128x128xf32>, vector<8x128xf32> -> vector<8x128xf32>
    %144 = arith.addf %141, %143 : vector<8x128xf32>
    %c0_75 = arith.constant 0 : index
    %c0_76 = arith.constant 0 : index
    %145 = vector.load %arg9[%c0_75, %c0_76] : memref<8x128xf32, #tpu.memory_space<vmem>>, vector<8x128xf32>
    tpu.vector_store %arg9[%c0_75, %c0_76], %144 {strides = array<i32>} : memref<8x128xf32, #tpu.memory_space<vmem>>, vector<8x128xf32>,
    %c1_i32 = arith.constant 1 : i32
    %146 = arith.cmpi eq, %arg1, %c1_i32 : i32
    %147 = arith.extui %146 : i1 to i32
    %c0_i32_77 = arith.constant 0 : i32
    %148 = arith.cmpi ne, %147, %c0_i32_77 : i32
    scf.if %148 {
      %c0_78 = arith.constant 0 : index
      %c0_79 = arith.constant 0 : index
      %149 = vector.load %arg9[%c0_78, %c0_79] : memref<8x128xf32, #tpu.memory_space<vmem>>, vector<8x128xf32>
      %c0_80 = arith.constant 0 : index
      %c0_81 = arith.constant 0 : index
      %150 = vector.load %arg7[%c0_80, %c0_81] : memref<1x128xf32, #tpu.memory_space<vmem>>, vector<1x128xf32>
      %151 = vector.broadcast %150 : vector<1x128xf32> to vector<8x128xf32>
      %152 = arith.addf %149, %151 : vector<8x128xf32>
      %c0_82 = arith.constant 0 : index
      %c0_83 = arith.constant 0 : index
      %153 = vector.load %arg8[%c0_82, %c0_83] : memref<8x128xf32, #tpu.memory_space<vmem>>, vector<8x128xf32>
      tpu.vector_store %arg8[%c0_82, %c0_83], %152 {strides = array<i32>} : memref<8x128xf32, #tpu.memory_space<vmem>>, vector<8x128xf32>,
    } else {
    }
    return
  }
  func.func @transform_0(%arg0: i32, %arg1: i32) -> (i32, i32) {
    %c0_i32 = arith.constant 0 : i32
    %c0_i32_0 = arith.constant 0 : i32
    return %c0_i32, %arg1 : i32, i32
  }
  func.func @transform_1(%arg0: i32, %arg1: i32) -> (i32, i32) {
    %c0_i32 = arith.constant 0 : i32
    return %arg1, %arg0 : i32, i32
  }
  func.func @transform_2(%arg0: i32, %arg1: i32) -> (i32, i32, i32) {
    %c0_i32 = arith.constant 0 : i32
    %c0_i32_0 = arith.constant 0 : i32
    return %arg1, %c0_i32, %arg0 : i32, i32, i32
  }
  func.func @transform_3(%arg0: i32, %arg1: i32) -> (i32, i32) {
    %c0_i32 = arith.constant 0 : i32
    return %arg1, %arg0 : i32, i32
  }
  func.func @transform_4(%arg0: i32, %arg1: i32) -> (i32, i32) {
    %c0_i32 = arith.constant 0 : i32
    %c0_i32_0 = arith.constant 0 : i32
    %c0_i32_1 = arith.constant 0 : i32
    return %c0_i32, %c0_i32_0 : i32, i32
  }
  func.func @transform_5(%arg0: i32, %arg1: i32) -> (i32, i32) {
    %c0_i32 = arith.constant 0 : i32
    %c0_i32_0 = arith.constant 0 : i32
    return %c0_i32, %arg0 : i32, i32
  }
  func.func @transform_6(%arg0: i32, %arg1: i32) -> (i32, i32) {
    %c0_i32 = arith.constant 0 : i32
    %c0_i32_0 = arith.constant 0 : i32
    return %c0_i32, %arg0 : i32, i32
  }
}

</mosaic_0001>

<bundles_post_ra>
// kernel: tpu_custom_call.1
= control target key start
LH: loop header
LB: loop body
LE: loop exit
PB: predicated region body
PF: predicated region fallthrough
CT: control target
= control target key end

     0   :  { %s4735_s0 = inlined_call_operand.vmem [shape: f32[8,2048], index: 0, kind: input, shape index: {}]   ;;  %s4736_s1 = inlined_call_operand.vmem [shape: s32[256,256], index: 1, kind: input, shape index: {}]   ;;  %s4737_s2 = inlined_call_operand.vmem [shape: f32[16,4,256], index: 2, kind: input, shape index: {}]   ;;  %s4738_s3 = inlined_call_operand.vmem [shape: f32[64,256], index: 3, kind: input, shape index: {}]   ;;  %s4739_s4 = inlined_call_operand.vmem [shape: f32[1024,32], index: 4, kind: input, shape index: {}]   ;;  %s4740_s5 = inlined_call_operand.vmem [shape: f32[1,256], index: 5, kind: input, shape index: {}]   ;;  %s4741_s6 = inlined_call_operand.hbm [shape: f32[8,256], index: 6, kind: output, shape index: {}]  }
   0x1   :  { %4747 = sst [smem:[#allocation13_spill]] %s4736_s1 }
   0x2   :  { %4748 = sst [smem:[#allocation14_spill]] %s4737_s2 }
   0x3   :  { %4749 = sst [smem:[#allocation15_spill]] %s4738_s3 }
   0x4   :  { %11 = vsyncpa [#allocation7], 0 }
   0x5   :  { %13 = vsyncpa [#allocation7 + $0x1], 0  ;;  %s3607_s21 = smov 0   ;;  %s3609_s22 = smov 0  }
   0x6   :  { %s3611_s23 = smov 0   ;;  %s3613_s24 = smov 0  }
   0x7   :  { %s3615_s25 = smov 0   ;;  %s3617_s26 = smov 0  }
   0x8   :  { %s3619_s27 = smov 0   ;;  %s3621_s28 = smov 0  }
   0x9   :  { %s3623_s29 = smov 0   ;;  %s3625_s30 = smov 0  }
   0xa LB: > { %4750 = sst [smem:[#allocation9_spill]] %s3557_s28  ;;  %s2709_s7 = sadd.s32 4294967295, %s3565_s30   ;;  %s3565_s30 = sphi %s3625_s30, %s19_s30   ;;  %s3561_s29 = sphi %s3623_s29, %s4767_s29   ;;  %s3557_s28 = sphi %s3621_s28, %s4766_s28   ;;  %s3553_s27 = sphi %s3619_s27, %s4765_s27   ;;  %s3549_s26 = sphi %s3617_s26, %s4764_s26   ;;  %s3545_s25 = sphi %s3615_s25, %s4772_s25   ;;  %s3541_s24 = sphi %s3613_s24, %s4771_s24   ;;  %s3537_s23 = sphi %s3611_s23, %s4770_s23   ;;  %s3533_s22 = sphi %s3609_s22, %s4769_s22   ;;  %s3529_s21 = sphi %s3607_s21, %s4768_s21  }
   0xb   : > { %4751 = sst [smem:[#allocation10_spill]] %s3561_s29  ;;  %s2710_s8 = sadd.s32 4294967294, %s3565_s30  }
   0xc   : > { %s28_s9 = sadd.s32 1, %s3557_s28  ;;  %s31_s10 = sadd.s32 1, %s3561_s29 }
   0xd   : > { %p29_p0 = scmp.ge.s32.totalorder %s28_s9, 2  ;;  %s66_s11 = sadd.s32 1, %s3545_s25 }
   0xe   : > { %p73_p1 = scmp.ne.s32.totalorder %s3545_s25, %s3541_s24  ;;  %p74_p2 = scmp.eq.s32.totalorder %s3565_s30, 0 }
   0xf   : > { %s4774_s9 = smov (%p29_p0, %s28_s9), 0  ;;  %s4776_s10 = smov (!%p29_p0, %s31_s10), %s3561_s29 }
  0x10   : > { %4752 = sst [smem:[#allocation11_spill]] %s4774_s9  ;;  %s61_s12 = ssub.s32 %s3557_s28, %s4774_s9 }
  0x11   : > { %p3670_p3 = por %p74_p2, %p73_p1  ;;  %p33_p4 = scmp.ge.s32.totalorder %s4776_s10, 2 }
  0x12   : > { %s195_s14 = sadd.s32 1, %s3537_s23  ;;  %p205_p5 = scmp.ne.s32.totalorder %s3537_s23, %s3533_s22 }
  0x13   : > { %p206_p6 = scmp.eq.s32.totalorder %s2709_s7, 3  ;;  %s4778_s10 = smov (%p33_p4, %s4776_s10), 0 }
  0x14   : > { %4754 = sst [smem:[#allocation12_spill]] %s4778_s10  ;;  %p211_p8 = scmp.ne.s32.totalorder %s3533_s22, %s3529_s21 }
  0x15   : > { %p3679_p7 = por %p206_p6, %p205_p5  ;;  %s62_s16 = ssub.s32 %s3561_s29, %s4778_s10 }
  0x16   : > { %p212_p9 = scmp.eq.s32.totalorder %s2710_s8, 3  ;;  %s63_s17 = sor.u32 %s62_s16, %s61_s12 }
  0x17   : > { %p193_p10 = scmp.eq.s32.totalorder %s62_s16, 0  ;;  %p64_p11 = scmp.eq.s32.totalorder %s63_s17, 0 }
  0x18   : > { %p3687_p12 = por %p212_p9, %p211_p8  ;;  %p2712_p13 = scmp.ge.s32.totalorder %s3565_s30, 4 }
  0x19   : > { %s3692_s19 = scalar_select %p193_p10, %s3537_s23, %s195_s14  }
  0x1a   : > { %s3695_s20 = scalar_select %p64_p11, %s3545_s25, %s66_s11  }
  0x1b   : > { %231 = sbr.rel (%p2712_p13) target bundleno = 77 (0x4d), region = 20 }
  0x20   : > { %243 = sbr.rel (!%p3670_p3) target bundleno = 50 (0x32), region = 28  ;;  %s245_s7 = sand.u32 (%p3670_p3), 1, %s3545_s25  }
  0x21   : > { %s2771_s8 = sshll.u32 (%p3670_p3), %s3557_s28, 5  ;;  %s2713_s12 = sshll.u32 (%p3670_p3), %s245_s7, 7 }
  0x22   : > { %s250_s16 = sadd.s32 (%p3670_p3), %s3561_s29, %s2771_s8  ;;  %s4757_s1 = sld [smem:[#allocation13_spill]] (%p3670_p3) }
  0x23   : > { %s2716_s17 = sshll.u32 (%p3670_p3), %s250_s16, 3  ;;  %s247_s11 = scalar_lea.vmem (%p3670_p3), [#allocation3], %s2713_s12 }
  0x28   : > { %s3706_s14 = scalar_lea.vmem %s4757_s1, %s2716_s17 }
  0x29   : > { %v311_v0 = vld [vmem:[%s3706_s14] sm:$0xff]  ;;  %v313_v1 = vld [vmem:[%s3706_s14 + $0x10] sm:$0xff] }
  0x2a   : > { %v315_v2 = vld [vmem:[%s3706_s14 + $0x20] sm:$0xff]  ;;  %312 = vst [vmem:[%s247_s11] sm:$0xff] %v311_v0  ;;  %314 = vst [vmem:[%s247_s11 + $0x8] sm:$0xff] %v313_v1  ;;  %v317_v3 = vld [vmem:[%s3706_s14 + $0x30] sm:$0xff] }
  0x2b   : > { %316 = vst [vmem:[%s247_s11 + $0x10] sm:$0xff] %v315_v2  ;;  %v319_v4 = vld [vmem:[%s3706_s14 + $0x40] sm:$0xff]  ;;  %v321_v5 = vld [vmem:[%s3706_s14 + $0x50] sm:$0xff]  ;;  %318 = vst [vmem:[%s247_s11 + $0x18] sm:$0xff] %v317_v3 }
  0x2c   : > { %320 = vst [vmem:[%s247_s11 + $0x20] sm:$0xff] %v319_v4  ;;  %322 = vst [vmem:[%s247_s11 + $0x28] sm:$0xff] %v321_v5  ;;  %v323_v6 = vld [vmem:[%s3706_s14 + $0x60] sm:$0xff]  ;;  %v325_v7 = vld [vmem:[%s3706_s14 + $0x70] sm:$0xff] }
  0x2d   : > { %v327_v8 = vld [vmem:[%s3706_s14 + $0x80] sm:$0xff]  ;;  %324 = vst [vmem:[%s247_s11 + $0x30] sm:$0xff] %v323_v6  ;;  %326 = vst [vmem:[%s247_s11 + $0x38] sm:$0xff] %v325_v7  ;;  %v329_v9 = vld [vmem:[%s3706_s14 + $0x90] sm:$0xff] }
  0x2e   : > { %328 = vst [vmem:[%s247_s11 + $0x40] sm:$0xff] %v327_v8  ;;  %v331_v10 = vld [vmem:[%s3706_s14 + $0xa0] sm:$0xff]  ;;  %v333_v11 = vld [vmem:[%s3706_s14 + $0xb0] sm:$0xff]  ;;  %330 = vst [vmem:[%s247_s11 + $0x48] sm:$0xff] %v329_v9 }
  0x2f   : > { %332 = vst [vmem:[%s247_s11 + $0x50] sm:$0xff] %v331_v10  ;;  %334 = vst [vmem:[%s247_s11 + $0x58] sm:$0xff] %v333_v11  ;;  %v335_v12 = vld [vmem:[%s3706_s14 + $0xc0] sm:$0xff]  ;;  %v337_v13 = vld [vmem:[%s3706_s14 + $0xd0] sm:$0xff] }
  0x30   : > { %v339_v14 = vld [vmem:[%s3706_s14 + $0xe0] sm:$0xff]  ;;  %336 = vst [vmem:[%s247_s11 + $0x60] sm:$0xff] %v335_v12  ;;  %338 = vst [vmem:[%s247_s11 + $0x68] sm:$0xff] %v337_v13  ;;  %v341_v15 = vld [vmem:[%s3706_s14 + $0xf0] sm:$0xff] }
  0x31   : > { %340 = vst [vmem:[%s247_s11 + $0x70] sm:$0xff] %v339_v14  ;;  %342 = vst [vmem:[%s247_s11 + $0x78] sm:$0xff] %v341_v15 }
  0x32 PF: > { %348 = sbr.rel (!%p3670_p3) target bundleno = 65 (0x41), region = 66  ;;  %s350_s9 = sand.u32 (%p3670_p3), 1, %s3545_s25  }
  0x33   : > { %s2772_s10 = sshll.u32 (%p3670_p3), %s3557_s28, 4  ;;  %s2717_s7 = sshll.u32 (%p3670_p3), %s350_s9, 5 }
  0x34   : > { %s355_s8 = sadd.s32 (%p3670_p3), %s3561_s29, %s2772_s10  ;;  %s4758_s2 = sld [smem:[#allocation14_spill]] (%p3670_p3) }
  0x35   : > { %s2720_s12 = sshll.u32 (%p3670_p3), %s355_s8, 2  ;;  %s352_s14 = scalar_lea.vmem (%p3670_p3), [#allocation4], %s2717_s7 }
  0x3a   : > { %s357_s1 = scalar_lea.vmem %s4758_s2, %s2720_s12 }
  0x3b   : > { %v374_v16 = vld [vmem:[%s357_s1] sm:$0xf]  ;;  %v376_v17 = vld [vmem:[%s357_s1 + $0x8] sm:$0xf]  ;;  %v378_v18 = vld [vmem:[%s357_s1 + $0x10] sm:$0xf] }
  0x3c   : > { %375 = vst [vmem:[%s352_s14] sm:$0xf] %v374_v16  ;;  %377 = vst [vmem:[%s352_s14 + $0x4] sm:$0xf] %v376_v17  ;;  %v380_v19 = vld [vmem:[%s357_s1 + $0x18] sm:$0xf] }
  0x3d   : > { %379 = vst [vmem:[%s352_s14 + $0x8] sm:$0xf] %v378_v18  ;;  %v382_v20 = vld [vmem:[%s357_s1 + $0x20] sm:$0xf]  ;;  %v384_v21 = vld [vmem:[%s357_s1 + $0x28] sm:$0xf] }
  0x3e   : > { %381 = vst [vmem:[%s352_s14 + $0xc] sm:$0xf] %v380_v19  ;;  %383 = vst [vmem:[%s352_s14 + $0x10] sm:$0xf] %v382_v20  ;;  %v386_v22 = vld [vmem:[%s357_s1 + $0x30] sm:$0xf] }
  0x3f   : > { %385 = vst [vmem:[%s352_s14 + $0x14] sm:$0xf] %v384_v21  ;;  %v388_v23 = vld [vmem:[%s357_s1 + $0x38] sm:$0xf]  ;;  %387 = vst [vmem:[%s352_s14 + $0x18] sm:$0xf] %v386_v22 }
  0x40   : > { %389 = vst [vmem:[%s352_s14 + $0x1c] sm:$0xf] %v388_v23 }
  0x41 PF: > { %429 = sbr.rel (!%p3670_p3) target bundleno = 77 (0x4d), region = 107  ;;  %s431_s11 = sand.u32 (%p3670_p3), 1, %s3545_s25  }
  0x42   : > { %s2773_s9 = sshll.u32 (%p3670_p3), %s3557_s28, 3  ;;  %s2721_s10 = sshll.u32 (%p3670_p3), %s431_s11, 5 }
  0x43   : > { %s436_s7 = sadd.s32 (%p3670_p3), %s3561_s29, %s2773_s9  ;;  %s4759_s3 = sld [smem:[#allocation15_spill]] (%p3670_p3) }
  0x44   : > { %s2724_s8 = sshll.u32 (%p3670_p3), %s436_s7, 3  ;;  %s433_s1 = scalar_lea.vmem (%p3670_p3), [#allocation5], %s2721_s10 }
  0x49   : > { %s438_s17 = scalar_lea.vmem %s4759_s3, %s2724_s8 }
  0x4a   : > { %v473_v24 = vld [vmem:[%s438_s17] sm:$0xff]  ;;  %v475_v25 = vld [vmem:[%s438_s17 + $0x10] sm:$0xff] }
  0x4b   : > { %v477_v26 = vld [vmem:[%s438_s17 + $0x20] sm:$0xff]  ;;  %474 = vst [vmem:[%s433_s1] sm:$0xff] %v473_v24  ;;  %476 = vst [vmem:[%s433_s1 + $0x8] sm:$0xff] %v475_v25  ;;  %v479_v27 = vld [vmem:[%s438_s17 + $0x30] sm:$0xff] }
  0x4c   : > { %478 = vst [vmem:[%s433_s1 + $0x10] sm:$0xff] %v477_v26  ;;  %480 = vst [vmem:[%s433_s1 + $0x18] sm:$0xff] %v479_v27 }
  0x4d PF: > { %p2725_p0 = scmp.ge.s32.totalorder %s3565_s30, 1  ;;  %p491_p1 = scmp.lt.s32.totalorder %s3565_s30, 5 }
  0x4f   : > { %p492_p2 = pnand %p2725_p0, %p491_p1 }
  0x50   : > { %s498_s13 = sand.u32 (!%p492_p2), 1, %s3541_s24   ;;  %s4744_s14 = sand.u32 (!%p492_p2), 1, %s3533_s22  }
  0x51   : > { %495 = sbr.rel (%p492_p2) target bundleno = 724 (0x2d4), region = 149  ;;  %s2726_s11 = sshll.u32 (!%p492_p2), %s498_s13, 7 }
  0x52   : > { %s2727_s9 = sshll.u32 (!%p492_p2), %s498_s13, 5  ;;  %s3746_s10 = sshll.u32 (!%p492_p2), %s4744_s14, 3 }
  0x53   : > { %s2730_s7 = sshll.u32 (!%p492_p2), %s3549_s26, 3  ;;  %p566_p4 = scmp.lt.s32.totalorder (!%p492_p2), %s3553_s27, 1 }
  0x54   : > { %p558_p3 = scmp.lt.s32.totalorder (!%p492_p2), %s2730_s7, 15  ;;  %s3762_s14 = scalar_lea.vmem (!%p492_p2), [#allocation3], %s2726_s11 }
  0x55   : > { %s3764_s3 = scalar_lea.vmem (!%p492_p2), [#allocation4], %s2727_s9  ;;  %s3766_s29 = scalar_lea.vmem (!%p492_p2), [#allocation5], %s2727_s9 }
  0x56   : > { %s4780_s7 = smov (!%p558_p3, %s2730_s7), 15  ;;  %p2732_p5 = scmp.ne.s32.totalorder %s3549_s26, 0 }
  0x57   : > { %s3751_s8 = scalar_select %p566_p4, %s3553_s27, 1 }
  0x58   : > { %s2731_s12 = sshll.u32 %s4780_s7, 3  ;;  %572 = sbr.rel (%p2732_p5) target bundleno = 95 (0x5f), region = 165 }
  0x59   : > { %s3756_s1 = scalar_lea.vmem %s4735_s0, %s2731_s12 }
  0x5d   : > { %v3567_v28 = vmov 0.0  }
  0x5e   : > { %573 = vst [vmem:[#allocation2] sm:$0xff] %v3567_v28 }
  0x5f PF: > { %v613_v29 = vld [vmem:[%s4739_s4 + $0xf8] sm:$0xff]  ;;  %v612_v33 = vld [vmem:[%s4739_s4 + $0xf0] sm:$0xff]  ;;  %v611_v37 = vld [vmem:[%s4739_s4 + $0xe8] sm:$0xff]  ;;  %vm3570_vm0 = vmmov 0   ;;  %vm995_vm1 = vcmask 261120   ;;  %p2765_p6 = scmp.ne.s32.totalorder %s3549_s26, 1 }
  0x60   : > { %v645_v30 = vld [vmem:[%s4739_s4 + $0x1f8] sm:$0xff]  ;;  %2774 = vmatprep.subr.mxu0 %v613_v29  ;;  %v644_v34 = vld [vmem:[%s4739_s4 + $0x1f0] sm:$0xff]  ;;  %v643_v38 = vld [vmem:[%s4739_s4 + $0x1e8] sm:$0xff] }
  0x61   : > { %v597_v31 = vld [vmem:[%s4739_s4 + $0x78] sm:$0xff]  ;;  %2809 = vmatprep.subr.mxu1 %v645_v30  ;;  %v596_v35 = vld [vmem:[%s4739_s4 + $0x70] sm:$0xff]  ;;  %v595_v39 = vld [vmem:[%s4739_s4 + $0x68] sm:$0xff] }
  0x62   : > { %v629_v32 = vld [vmem:[%s4739_s4 + $0x178] sm:$0xff]  ;;  %2775 = vmatpush3.msra.mxu0 %v597_v31  ;;  %v628_v36 = vld [vmem:[%s4739_s4 + $0x170] sm:$0xff]  ;;  %v627_v40 = vld [vmem:[%s4739_s4 + $0x168] sm:$0xff] }
  0x63   : > { %2810 = vmatpush3.msra.mxu1 %v629_v32  ;;  %2776 = vmatprep.subr.mxu0 %v612_v33  ;;  %v610_v41 = vld [vmem:[%s4739_s4 + $0xe0] sm:$0xff]  ;;  %v609_v45 = vld [vmem:[%s4739_s4 + $0xd8] sm:$0xff]  ;;  %v608_v49 = vld [vmem:[%s4739_s4 + $0xd0] sm:$0xff] }
  0x64   : > { %2811 = vmatprep.subr.mxu1 %v644_v34  ;;  %2777 = vmatpush3.msra.mxu0 %v596_v35  ;;  %v642_v42 = vld [vmem:[%s4739_s4 + $0x1e0] sm:$0xff]  ;;  %v641_v46 = vld [vmem:[%s4739_s4 + $0x1d8] sm:$0xff]  ;;  %v640_v50 = vld [vmem:[%s4739_s4 + $0x1d0] sm:$0xff] }
  0x65   : > { %2812 = vmatpush3.msra.mxu1 %v628_v36  ;;  %2778 = vmatprep.subr.mxu0 %v611_v37  ;;  %v594_v43 = vld [vmem:[%s4739_s4 + $0x60] sm:$0xff]  ;;  %v593_v47 = vld [vmem:[%s4739_s4 + $0x58] sm:$0xff]  ;;  %v592_v51 = vld [vmem:[%s4739_s4 + $0x50] sm:$0xff] }
  0x66   : > { %2813 = vmatprep.subr.mxu1 %v643_v38  ;;  %v626_v44 = vld [vmem:[%s4739_s4 + $0x160] sm:$0xff]  ;;  %2779 = vmatpush3.msra.mxu0 %v595_v39  ;;  %v625_v48 = vld [vmem:[%s4739_s4 + $0x158] sm:$0xff]  ;;  %v624_v52 = vld [vmem:[%s4739_s4 + $0x150] sm:$0xff] }
  0x67   : > { %2814 = vmatpush3.msra.mxu1 %v627_v40  ;;  %2780 = vmatprep.subr.mxu0 %v610_v41  ;;  %v607_v53 = vld [vmem:[%s4739_s4 + $0xc8] sm:$0xff]  ;;  %v606_v57 = vld [vmem:[%s4739_s4 + $0xc0] sm:$0xff]  ;;  %v605_v61 = vld [vmem:[%s4739_s4 + $0xb8] sm:$0xff] }
  0x68   : > { %2815 = vmatprep.subr.mxu1 %v642_v42  ;;  %2781 = vmatpush3.msra.mxu0 %v594_v43  ;;  %v639_v54 = vld [vmem:[%s4739_s4 + $0x1c8] sm:$0xff]  ;;  %v638_v58 = vld [vmem:[%s4739_s4 + $0x1c0] sm:$0xff]  ;;  %v637_v62 = vld [vmem:[%s4739_s4 + $0x1b8] sm:$0xff] }
  0x69   : > { %2816 = vmatpush3.msra.mxu1 %v626_v44  ;;  %2782 = vmatprep.subr.mxu0 %v609_v45  ;;  %v591_v55 = vld [vmem:[%s4739_s4 + $0x48] sm:$0xff]  ;;  %v590_v59 = vld [vmem:[%s4739_s4 + $0x40] sm:$0xff]  ;;  %v589_v63 = vld [vmem:[%s4739_s4 + $0x38] sm:$0xff] }
  0x6a   : > { %2817 = vmatprep.subr.mxu1 %v641_v46  ;;  %2783 = vmatpush3.msra.mxu0 %v593_v47  ;;  %v623_v56 = vld [vmem:[%s4739_s4 + $0x148] sm:$0xff]  ;;  %v622_v60 = vld [vmem:[%s4739_s4 + $0x140] sm:$0xff]  ;;  %v621_v0 = vld [vmem:[%s4739_s4 + $0x138] sm:$0xff] }
  0x6b   : > { %2818 = vmatpush3.msra.mxu1 %v625_v48  ;;  %2784 = vmatprep.subr.mxu0 %v608_v49  ;;  %v604_v1 = vld [vmem:[%s4739_s4 + $0xb0] sm:$0xff]  ;;  %v603_v5 = vld [vmem:[%s4739_s4 + $0xa8] sm:$0xff]  ;;  %v602_v9 = vld [vmem:[%s4739_s4 + $0xa0] sm:$0xff] }
  0x6c   : > { %2819 = vmatprep.subr.mxu1 %v640_v50  ;;  %2785 = vmatpush3.msra.mxu0 %v592_v51  ;;  %v636_v2 = vld [vmem:[%s4739_s4 + $0x1b0] sm:$0xff]  ;;  %v635_v6 = vld [vmem:[%s4739_s4 + $0x1a8] sm:$0xff]  ;;  %v634_v10 = vld [vmem:[%s4739_s4 + $0x1a0] sm:$0xff] }
  0x6d   : > { %2820 = vmatpush3.msra.mxu1 %v624_v52  ;;  %2786 = vmatprep.subr.mxu0 %v607_v53  ;;  %v588_v3 = vld [vmem:[%s4739_s4 + $0x30] sm:$0xff]  ;;  %v587_v7 = vld [vmem:[%s4739_s4 + $0x28] sm:$0xff]  ;;  %v586_v11 = vld [vmem:[%s4739_s4 + $0x20] sm:$0xff] }
  0x6e   : > { %2821 = vmatprep.subr.mxu1 %v639_v54  ;;  %2787 = vmatpush3.msra.mxu0 %v591_v55  ;;  %v620_v4 = vld [vmem:[%s4739_s4 + $0x130] sm:$0xff]  ;;  %v619_v8 = vld [vmem:[%s4739_s4 + $0x128] sm:$0xff]  ;;  %v618_v12 = vld [vmem:[%s4739_s4 + $0x120] sm:$0xff] }
  0x6f   : > { %2822 = vmatpush3.msra.mxu1 %v623_v56  ;;  %2788 = vmatprep.subr.mxu0 %v606_v57  ;;  %v601_v13 = vld [vmem:[%s4739_s4 + $0x98] sm:$0xff]  ;;  %v600_v17 = vld [vmem:[%s4739_s4 + $0x90] sm:$0xff]  ;;  %v599_v21 = vld [vmem:[%s4739_s4 + $0x88] sm:$0xff] }
  0x70   : > { %2823 = vmatprep.subr.mxu1 %v638_v58  ;;  %2789 = vmatpush3.msra.mxu0 %v590_v59  ;;  %v633_v14 = vld [vmem:[%s4739_s4 + $0x198] sm:$0xff]  ;;  %v632_v18 = vld [vmem:[%s4739_s4 + $0x190] sm:$0xff]  ;;  %v631_v22 = vld [vmem:[%s4739_s4 + $0x188] sm:$0xff] }
  0x71   : > { %2824 = vmatpush3.msra.mxu1 %v622_v60  ;;  %2790 = vmatprep.subr.mxu0 %v605_v61  ;;  %v585_v15 = vld [vmem:[%s4739_s4 + $0x18] sm:$0xff]  ;;  %v584_v19 = vld [vmem:[%s4739_s4 + $0x10] sm:$0xff]  ;;  %v583_v23 = vld [vmem:[%s4739_s4 + $0x8] sm:$0xff] }
  0x72   : > { %2825 = vmatprep.subr.mxu1 %v637_v62  ;;  %2791 = vmatpush3.msra.mxu0 %v589_v63  ;;  %v617_v16 = vld [vmem:[%s4739_s4 + $0x118] sm:$0xff]  ;;  %v616_v20 = vld [vmem:[%s4739_s4 + $0x110] sm:$0xff]  ;;  %v615_v24 = vld [vmem:[%s4739_s4 + $0x108] sm:$0xff] }
  0x73   : > { %2826 = vmatpush3.msra.mxu1 %v621_v0  ;;  %2792 = vmatprep.subr.mxu0 %v604_v1  ;;  %v598_v25 = vld [vmem:[%s4739_s4 + $0x80] sm:$0xff]  ;;  %v575_v28 = vld [vmem:[%s3756_s1 + $0x8] sm:$0xff]  ;;  %v577_v30 = vld [vmem:[%s3756_s1 + $0x18] sm:$0xff] }
  0x74   : > { %2827 = vmatprep.subr.mxu1 %v636_v2  ;;  %2793 = vmatpush3.msra.mxu0 %v588_v3  ;;  %v630_v26 = vld [vmem:[%s4739_s4 + $0x180] sm:$0xff]  ;;  %v3968_v32 = vld [vmem:[%s3756_s1 + $0x10] sm:$0xff]  ;;  %v677_v33 = vld [vmem:[%s4739_s4 + $0x2f8] sm:$0xff] }
  0x75   : > { %2828 = vmatpush3.msra.mxu1 %v620_v4  ;;  %2794 = vmatprep.subr.mxu0 %v603_v5  ;;  %v582_v27 = vld [vmem:[%s4739_s4] sm:$0xff]  ;;  %v709_v34 = vld [vmem:[%s4739_s4 + $0x3f8] sm:$0xff]  ;;  %v676_v37 = vld [vmem:[%s4739_s4 + $0x2f0] sm:$0xff] }
  0x76   : > { %2829 = vmatprep.subr.mxu1 %v635_v6  ;;  %2795 = vmatpush3.msra.mxu0 %v587_v7  ;;  %v614_v29 = vld [vmem:[%s4739_s4 + $0x100] sm:$0xff]  ;;  %v661_v35 = vld [vmem:[%s4739_s4 + $0x278] sm:$0xff]  ;;  %v708_v38 = vld [vmem:[%s4739_s4 + $0x3f0] sm:$0xff] }
  0x77   : > { %2830 = vmatpush3.msra.mxu1 %v619_v8  ;;  %2796 = vmatprep.subr.mxu0 %v602_v9  ;;  %v3965_v31 = vld [vmem:[%s3756_s1] sm:$0xff]  ;;  %v693_v36 = vld [vmem:[%s4739_s4 + $0x378] sm:$0xff]  ;;  %v660_v39 = vld [vmem:[%s4739_s4 + $0x270] sm:$0xff] }
  0x78   : > { %2831 = vmatprep.subr.mxu1 %v634_v10  ;;  %2797 = vmatpush3.msra.mxu0 %v586_v11  ;;  %v692_v40 = vld [vmem:[%s4739_s4 + $0x370] sm:$0xff]  ;;  %v675_v41 = vld [vmem:[%s4739_s4 + $0x2e8] sm:$0xff]  ;;  %v674_v45 = vld [vmem:[%s4739_s4 + $0x2e0] sm:$0xff] }
  0x79   : > { %2832 = vmatpush3.msra.mxu1 %v618_v12  ;;  %2798 = vmatprep.subr.mxu0 %v601_v13  ;;  %v707_v42 = vld [vmem:[%s4739_s4 + $0x3e8] sm:$0xff]  ;;  %v706_v46 = vld [vmem:[%s4739_s4 + $0x3e0] sm:$0xff]  ;;  %v673_v49 = vld [vmem:[%s4739_s4 + $0x2d8] sm:$0xff] }
  0x7a   : > { %2833 = vmatprep.subr.mxu1 %v633_v14  ;;  %2799 = vmatpush3.msra.mxu0 %v585_v15  ;;  %v659_v43 = vld [vmem:[%s4739_s4 + $0x268] sm:$0xff]  ;;  %v658_v47 = vld [vmem:[%s4739_s4 + $0x260] sm:$0xff]  ;;  %v705_v50 = vld [vmem:[%s4739_s4 + $0x3d8] sm:$0xff] }
  0x7b   : > { %2834 = vmatpush3.msra.mxu1 %v617_v16  ;;  %2800 = vmatprep.subr.mxu0 %v600_v17  ;;  %v691_v44 = vld [vmem:[%s4739_s4 + $0x368] sm:$0xff]  ;;  %v690_v48 = vld [vmem:[%s4739_s4 + $0x360] sm:$0xff]  ;;  %v657_v51 = vld [vmem:[%s4739_s4 + $0x258] sm:$0xff] }
  0x7c   : > { %2835 = vmatprep.subr.mxu1 %v632_v18  ;;  %2801 = vmatpush3.msra.mxu0 %v584_v19  ;;  %v689_v52 = vld [vmem:[%s4739_s4 + $0x358] sm:$0xff]  ;;  %v672_v53 = vld [vmem:[%s4739_s4 + $0x2d0] sm:$0xff]  ;;  %v671_v57 = vld [vmem:[%s4739_s4 + $0x2c8] sm:$0xff] }
  0x7d   : > { %2836 = vmatpush3.msra.mxu1 %v616_v20  ;;  %2802 = vmatprep.subr.mxu0 %v599_v21  ;;  %v704_v54 = vld [vmem:[%s4739_s4 + $0x3d0] sm:$0xff]  ;;  %v703_v58 = vld [vmem:[%s4739_s4 + $0x3c8] sm:$0xff]  ;;  %v670_v61 = vld [vmem:[%s4739_s4 + $0x2c0] sm:$0xff] }
  0x7e   : > { %2837 = vmatprep.subr.mxu1 %v631_v22  ;;  %2803 = vmatpush3.msra.mxu0 %v583_v23  ;;  %v656_v55 = vld [vmem:[%s4739_s4 + $0x250] sm:$0xff]  ;;  %v655_v59 = vld [vmem:[%s4739_s4 + $0x248] sm:$0xff]  ;;  %v702_v62 = vld [vmem:[%s4739_s4 + $0x3c0] sm:$0xff] }
  0x7f   : > { %2838 = vmatpush3.msra.mxu1 %v615_v24  ;;  %2804 = vmatprep.subr.mxu0 %v598_v25  ;;  %v688_v56 = vld [vmem:[%s4739_s4 + $0x350] sm:$0xff]  ;;  %v687_v60 = vld [vmem:[%s4739_s4 + $0x348] sm:$0xff]  ;;  %v654_v63 = vld [vmem:[%s4739_s4 + $0x240] sm:$0xff] }
  0x80   : > { %2839 = vmatprep.subr.mxu1 %v630_v26  ;;  %2805 = vmatpush3.msra.mxu0 %v582_v27  ;;  %v686_v0 = vld [vmem:[%s4739_s4 + $0x340] sm:$0xff]  ;;  %v669_v1 = vld [vmem:[%s4739_s4 + $0x2b8] sm:$0xff]  ;;  %v668_v5 = vld [vmem:[%s4739_s4 + $0x2b0] sm:$0xff] }
  0x81   : > { %774 = vmatprep.mubr.f32.mxu0 %v575_v28  ;;  %2840 = vmatpush3.msra.mxu1 %v614_v29  ;;  %v701_v2 = vld [vmem:[%s4739_s4 + $0x3b8] sm:$0xff]  ;;  %v700_v6 = vld [vmem:[%s4739_s4 + $0x3b0] sm:$0xff]  ;;  %v667_v9 = vld [vmem:[%s4739_s4 + $0x2a8] sm:$0xff] }
  0x82   : > { %844 = vmatprep.mubr.f32.mxu1 %v577_v30  ;;  %775 = vmatmul.mubr.f32.vlgmr.msra.gmra.mxu0 %v3965_v31  ;;  %v653_v3 = vld [vmem:[%s4739_s4 + $0x238] sm:$0xff]  ;;  %v652_v7 = vld [vmem:[%s4739_s4 + $0x230] sm:$0xff]  ;;  %v699_v10 = vld [vmem:[%s4739_s4 + $0x3a8] sm:$0xff] }
  0x83   : > { %845 = vmatmul.mubr.f32.vlgmr.msra.gmra.mxu1 %v3968_v32  ;;  %2844 = vmatprep.subr.mxu0 %v677_v33  ;;  %v685_v4 = vld [vmem:[%s4739_s4 + $0x338] sm:$0xff]  ;;  %v684_v8 = vld [vmem:[%s4739_s4 + $0x330] sm:$0xff]  ;;  %v651_v11 = vld [vmem:[%s4739_s4 + $0x228] sm:$0xff] }
  0x84   : > { %2879 = vmatprep.subr.mxu1 %v709_v34  ;;  %2845 = vmatpush3.msra.mxu0 %v661_v35  ;;  %v683_v12 = vld [vmem:[%s4739_s4 + $0x328] sm:$0xff]  ;;  %v666_v13 = vld [vmem:[%s4739_s4 + $0x2a0] sm:$0xff]  ;;  %v665_v17 = vld [vmem:[%s4739_s4 + $0x298] sm:$0xff] }
  0x85   : > { %2880 = vmatpush3.msra.mxu1 %v693_v36  ;;  %2846 = vmatprep.subr.mxu0 %v676_v37  ;;  %v698_v14 = vld [vmem:[%s4739_s4 + $0x3a0] sm:$0xff]  ;;  %v697_v18 = vld [vmem:[%s4739_s4 + $0x398] sm:$0xff]  ;;  %v664_v21 = vld [vmem:[%s4739_s4 + $0x290] sm:$0xff] }
  0x86   : > { %2881 = vmatprep.subr.mxu1 %v708_v38  ;;  %2847 = vmatpush3.msra.mxu0 %v660_v39  ;;  %v650_v15 = vld [vmem:[%s4739_s4 + $0x220] sm:$0xff]  ;;  %v649_v19 = vld [vmem:[%s4739_s4 + $0x218] sm:$0xff]  ;;  %v696_v22 = vld [vmem:[%s4739_s4 + $0x390] sm:$0xff]  ;;  %v3568_v39 = vmov 1966171168  }
  0x87   : > { %2882 = vmatpush3.msra.mxu1 %v692_v40  ;;  %2848 = vmatprep.subr.mxu0 %v675_v41  ;;  %v682_v16 = vld [vmem:[%s4739_s4 + $0x320] sm:$0xff]  ;;  %v681_v20 = vld [vmem:[%s4739_s4 + $0x318] sm:$0xff]  ;;  %v648_v23 = vld [vmem:[%s4739_s4 + $0x210] sm:$0xff]  ;;  %v1130_v40 = vunpack.c.l.s4 %v3568_v39  ;;  %v1132_v41 = vlaneseq }
  0x88   : > { %2883 = vmatprep.subr.mxu1 %v707_v42  ;;  %2849 = vmatpush3.msra.mxu0 %v659_v43  ;;  %v680_v24 = vld [vmem:[%s4739_s4 + $0x310] sm:$0xff]  ;;  %v663_v25 = vld [vmem:[%s4739_s4 + $0x288] sm:$0xff]  ;;  %v662_v29 = vld [vmem:[%s4739_s4 + $0x280] sm:$0xff] }
  0x89   : > { %2884 = vmatpush3.msra.mxu1 %v691_v44  ;;  %2850 = vmatprep.subr.mxu0 %v674_v45  ;;  %v695_v26 = vld [vmem:[%s4739_s4 + $0x388] sm:$0xff]  ;;  %v694_v30 = vld [vmem:[%s4739_s4 + $0x380] sm:$0xff]  ;;  %v581_v36 = vld [vmem:[%s3756_s1 + $0x38] sm:$0xff]  ;;  %v1131_v42 = vunpack.c.0.s8 %v1130_v40  ;;  %v1133_v43 = vshrl.u32 %v1132_v41, 7 }
  0x8a   : > { %2885 = vmatprep.subr.mxu1 %v706_v46  ;;  %2851 = vmatpush3.msra.mxu0 %v658_v47  ;;  %v647_v27 = vld [vmem:[%s4739_s4 + $0x208] sm:$0xff]  ;;  %v646_v33 = vld [vmem:[%s4739_s4 + $0x200] sm:$0xff]  ;;  %v4170_v38 = vld [vmem:[%s3756_s1 + $0x30] sm:$0xff] }
  0x8b   : > { %2886 = vmatpush3.msra.mxu1 %v690_v48  ;;  %2852 = vmatprep.subr.mxu0 %v673_v49  ;;  %v679_v28 = vld [vmem:[%s4739_s4 + $0x308] sm:$0xff]  ;;  %v678_v35 = vld [vmem:[%s4739_s4 + $0x300] sm:$0xff]  ;;  %v4175_v46 = vsub.s32 %v1131_v42, %v1133_v43  ;;  %v4181_v49 = vsub.s32 0, %v1133_v43 }
  0x8c   : > { %2887 = vmatprep.subr.mxu1 %v705_v50  ;;  %2853 = vmatpush3.msra.mxu0 %v657_v51  ;;  %v579_v34 = vld [vmem:[%s3756_s1 + $0x28] sm:$0xff]  ;;  %v4167_v37 = vld [vmem:[%s3756_s1 + $0x20] sm:$0xff]  ;;  %v4184_v50 = vld [vmem:[%s3762_s14 + $0x70] sm:$0xff] }
  0x8d   : > { %2888 = vmatpush3.msra.mxu1 %v689_v52  ;;  %2854 = vmatprep.subr.mxu0 %v672_v53  ;;  %v2734_v44 = vld.sshfl [vmem:[%s3764_s3] sm:$0x33 pattern:$0x75316420]  ;;  %v4178_v47 = vld [vmem:[%s3762_s14 + $0x78] sm:$0xff]  ;;  %v4187_v51 = vld [vmem:[%s3762_s14 + $0x68] sm:$0xff] }
  0x8e   : > { %2889 = vmatprep.subr.mxu1 %v704_v54  ;;  %2855 = vmatpush3.msra.mxu0 %v656_v55  ;;  %v1128_v45 = vcombine.high %v2734_v44, %v2734_v44  ;;  %v4190_v52 = vrot.slane %v2734_v44, %v4175_v46  ;;  %v3569_v53 = vmov 0.0   ;;  %v1102_v54 = vand.u32 15, %v4178_v47  ;;  %v4248_v43 = vld [vmem:[%s3762_s14 + $0x18] sm:$0xff] }
  0x8f   : > { %2890 = vmatpush3.msra.mxu1 %v688_v56  ;;  %2856 = vmatprep.subr.mxu0 %v671_v57  ;;  %v1101_v55 = vand.u32 15, %v4184_v50  ;;  %v1100_v56 = vand.u32 15, %v4187_v51  ;;  %v4197_v57 = vld [vmem:[%s3762_s14 + $0x60] sm:$0xff]  ;;  %v1090_v44 = vand.u32 15, %v4248_v43 }
  0x90   : > { %2891 = vmatprep.subr.mxu1 %v703_v58  ;;  %2857 = vmatpush3.msra.mxu0 %v655_v59  ;;  %v1142_v48 = vrot.slane %v1128_v45, %v4175_v46  ;;  %v4200_v58 = vld [vmem:[%s3762_s14 + $0x58] sm:$0xff] }
  0x91   : > { %2892 = vmatpush3.msra.mxu1 %v687_v60  ;;  %2858 = vmatprep.subr.mxu0 %v670_v61  ;;  %v1099_v60 = vand.u32 15, %v4197_v57  ;;  %v1118_v61 = vcvt.s32.f32 %v1102_v54  ;;  %v994_v54 = vld [vmem:[%s3766_s29 + $0x18] sm:$0xff] }
  0x92   : > { %2893 = vmatprep.subr.mxu1 %v702_v62  ;;  %2859 = vmatpush3.msra.mxu0 %v654_v63  ;;  %v1144_v59 = vcombine.high %v1142_v48, %v1142_v48  ;;  %v1117_v62 = vcvt.s32.f32 %v1101_v55  ;;  %v4205_v63 = vld [vmem:[%s3762_s14 + $0x50] sm:$0xff]  ;;  %v1106_v55 = vcvt.s32.f32 %v1090_v44 }
  0x93   : > { %2894 = vmatpush3.msra.mxu1 %v686_v0  ;;  %2860 = vmatprep.subr.mxu0 %v669_v1  ;;  %v1116_v1 = vcvt.s32.f32 %v1100_v56  ;;  %v1148_v56 = vrot.slane %v4190_v52, %v4181_v49 }
  0x94   : > { %2895 = vmatprep.subr.mxu1 %v701_v2  ;;  %2861 = vmatpush3.msra.mxu0 %v653_v3  ;;  %v1160_v0 = vrot.slane %v1144_v59, %v4181_v49  ;;  %v1098_v2 = vand.u32 15, %v4200_v58  ;;  %v1143_v3 = vcombine.high %v4190_v52, %v4190_v52  ;;  %v4269_v52 = vld [vmem:[%s3762_s14] sm:$0xff] }
  0x95   : > { %2896 = vmatpush3.msra.mxu1 %v685_v4  ;;  %2862 = vmatprep.subr.mxu0 %v668_v5  ;;  %v4212_v4 = vld [vmem:[%s3762_s14 + $0x48] sm:$0xff] }
  0x96   : > { %2897 = vmatprep.subr.mxu1 %v700_v6  ;;  %2863 = vmatpush3.msra.mxu0 %v652_v7  ;;  %v1180_v5 = vmul.f32 %v1160_v0, %v1118_v61  ;;  %v1179_v6 = vmul.f32 %v1160_v0, %v1117_v62  ;;  %v1115_v7 = vcvt.s32.f32 %v1099_v60  ;;  %v4261_v60 = vld [vmem:[%s3762_s14 + $0x8] sm:$0xff]  ;;  %v993_v62 = vld [vmem:[%s3766_s29 + $0x10] sm:$0xff] }
  0x97   : > { %2898 = vmatpush3.msra.mxu1 %v684_v8  ;;  %2864 = vmatprep.subr.mxu0 %v667_v9  ;;  %v1097_v8 = vand.u32 15, %v4205_v63  ;;  %v1178_v9 = vmul.f32 %v1160_v0, %v1116_v1  ;;  %v2738_v61 = vld.sshfl [vmem:[%s3764_s3 + $0x8] sm:$0x33 pattern:$0x75316420] }
  0x98   : > { %2899 = vmatprep.subr.mxu1 %v699_v10  ;;  %2865 = vmatpush3.msra.mxu0 %v651_v11  ;;  %v1114_v10 = vcvt.s32.f32 %v1098_v2  ;;  %v1156_v11 = vrot.slane %v1143_v3, %v4181_v49  ;;  %v1088_v2 = vand.u32 15, %v4261_v60  ;;  %v1496_v3 = vcombine.high %v2738_v61, %v2738_v61 }
  0x99   : > { %2900 = vmatpush3.msra.mxu1 %v683_v12  ;;  %2866 = vmatprep.subr.mxu0 %v666_v13  ;;  %v1096_v12 = vand.u32 15, %v4212_v4  ;;  %v1177_v13 = vmul.f32 %v1160_v0, %v1115_v7  ;;  %v1168_v0 = vmul.f32 %v1148_v56, %v1106_v55 }
  0x9a   : > { %2901 = vmatprep.subr.mxu1 %v698_v14  ;;  %2867 = vmatpush3.msra.mxu0 %v650_v15  ;;  %v1113_v14 = vcvt.s32.f32 %v1097_v8  ;;  %v1176_v15 = vmul.f32 %v1156_v11, %v1114_v10  ;;  %v1104_v7 = vcvt.s32.f32 %v1088_v2  ;;  %v1087_v8 = vand.u32 15, %v4269_v52 }
  0x9b   : > { %2902 = vmatpush3.msra.mxu1 %v682_v16  ;;  %2868 = vmatprep.subr.mxu0 %v665_v17  ;;  %v1112_v16 = vcvt.s32.f32 %v1096_v12  ;;  %v4277_v10 = vrot.slane %v1496_v3, %v4175_v46 }
  0x9c   : > { %2903 = vmatprep.subr.mxu1 %v697_v18  ;;  %2869 = vmatpush3.msra.mxu0 %v649_v19  ;;  %v1175_v17 = vmul.f32 %v1156_v11, %v1113_v14  ;;  %v4222_v18 = vld [vmem:[%s3762_s14 + $0x40] sm:$0xff]  ;;  %v1166_v12 = vmul.f32 %v1148_v56, %v1104_v7 }
  0x9d   : > { %2904 = vmatpush3.msra.mxu1 %v681_v20  ;;  %2870 = vmatprep.subr.mxu0 %v664_v21  ;;  %v1174_v19 = vmul.f32 %v1156_v11, %v1112_v16  ;;  %v1095_v20 = vand.u32 15, %v4222_v18  ;;  %v4227_v21 = vld [vmem:[%s3762_s14 + $0x38] sm:$0xff] }
  0x9e   : > { %2905 = vmatprep.subr.mxu1 %v696_v22  ;;  %2871 = vmatpush3.msra.mxu0 %v648_v23  ;;  %v1094_v23 = vand.u32 15, %v4227_v21  ;;  %v1445_v3 = vshra.s32 %v4227_v21, 8 }
  0x9f   : > { %2906 = vmatpush3.msra.mxu1 %v680_v24  ;;  %2872 = vmatprep.subr.mxu0 %v663_v25  ;;  %v1111_v22 = vcvt.s32.f32 %v1095_v20  ;;  %v4232_v24 = vld [vmem:[%s3762_s14 + $0x30] sm:$0xff]  ;;  %v1451_v20 = vshra.s32 %v4187_v51, 8 }
  0xa0   : > { %2907 = vmatprep.subr.mxu1 %v695_v26  ;;  %2873 = vmatpush3.msra.mxu0 %v647_v27  ;;  %v1110_v26 = vcvt.s32.f32 %v1094_v23  ;;  %v1152_v27 = vrot.slane %v1142_v48, %v4181_v49  ;;  %v4253_v48 = vld [vmem:[%s3762_s14 + $0x10] sm:$0xff]  ;;  %v1461_v7 = vand.u32 15, %v1445_v3  ;;  %v1820_v3 = vshra.s32 %v4184_v50, 16 }
  0xa1   : > { %2908 = vmatpush3.msra.mxu1 %v679_v28  ;;  %2874 = vmatprep.subr.mxu0 %v662_v29  ;;  %v1173_v25 = vmul.f32 %v1156_v11, %v1111_v22  ;;  %v1093_v28 = vand.u32 15, %v4232_v24  ;;  %v4238_v29 = vld [vmem:[%s3762_s14 + $0x28] sm:$0xff]  ;;  %v1089_v59 = vand.u32 15, %v4253_v48  ;;  %v991_v11 = vld [vmem:[%s3766_s29] sm:$0xff] }
  0xa2   : > { %2909 = vmatprep.subr.mxu1 %v694_v30  ;;  %2875 = vmatpush3.msra.mxu0 %v646_v33  ;;  %v1172_v30 = vmul.f32 %v1152_v27, %v1110_v26 }
  0xa3   : > { %914 = vmatprep.mubr.f32.mxu0 %v579_v34  ;;  %2910 = vmatpush3.msra.mxu1 %v678_v35  ;;  %v1109_v33 = vcvt.s32.f32 %v1093_v28  ;;  %v1092_v34 = vand.u32 15, %v4238_v29  ;;  %v4243_v35 = vld [vmem:[%s3762_s14 + $0x20] sm:$0xff]  ;;  %v1105_v1 = vcvt.s32.f32 %v1089_v59 }
  0xa4   : > { %984 = vmatprep.mubr.f32.mxu1 %v581_v36  ;;  %915 = vmatmul.mubr.f32.vlgmr.msra.gmra.mxu0 %v4167_v37  ;;  %v1091_v40 = vand.u32 15, %v4243_v35 }
  0xa5   : > { %985 = vmatmul.mubr.f32.vlgmr.msra.gmra.mxu1 %v4170_v38  ;;  %3066 = vmatprep.subr.mxu1 %v3569_v53  ;;  %v1171_v36 = vmul.f32 %v1152_v27, %v1109_v33  ;;  %v1108_v39 = vcvt.s32.f32 %v1092_v34  ;;  %v1450_v34 = vshra.s32 %v4197_v57, 8 }
  0xa6   : > { %3055 = vmatprep.subr.mxu0 %v3569_v53  ;;  %3067 = vmatpush3.msra.mxu1 %v1180_v5  ;;  %v1107_v42 = vcvt.s32.f32 %v1091_v40  ;;  %v992_v5 = vld [vmem:[%s3766_s29 + $0x8] sm:$0xff]  ;;  %v1503_v40 = vrot.slane %v2738_v61, %v4175_v46  ;;  %v1447_v61 = vshra.s32 %v4212_v4, 8 }
  0xa7   : > { %3068 = vmatprep.subr.mxu1 %v3569_v53  ;;  %v1170_v41 = vmul.f32 %v1152_v27, %v1108_v39  ;;  %3056 = vmatpush3.msra.mxu0 %v994_v54  ;;  %v1466_v39 = vand.u32 15, %v1450_v34 }
  0xa8   : > { %3069 = vmatpush3.msra.mxu1 %v1179_v6  ;;  %v1169_v45 = vmul.f32 %v1152_v27, %v1107_v42  ;;  %3057 = vmatprep.subr.mxu0 %v3569_v53  ;;  %v1167_v6 = vmul.f32 %v1148_v56, %v1105_v1  ;;  %v1511_v44 = vcombine.high %v1503_v40, %v1503_v40  ;;  %v1446_v1 = vshra.s32 %v4222_v18, 8 }
  0xa9   : > { %3070 = vmatprep.subr.mxu1 %v3569_v53  ;;  %3058 = vmatpush3.msra.mxu0 %v993_v62  ;;  %v1463_v2 = vand.u32 15, %v1447_v61 }
  0xaa   : > { %3071 = vmatpush3.msra.mxu1 %v1178_v9  ;;  %3059 = vmatprep.subr.mxu0 %v3569_v53  ;;  %v1453_v9 = vshra.s32 %v4178_v47, 8 }
  0xab   : > { %3072 = vmatprep.subr.mxu1 %v3569_v53  ;;  %3060 = vmatpush3.msra.mxu0 %v992_v5  ;;  %v1462_v5 = vand.u32 15, %v1446_v1  ;;  %v1821_v1 = vshra.s32 %v4178_v47, 16 }
  0xac   : > { %3073 = vmatpush3.msra.mxu1 %v1177_v13  ;;  %3061 = vmatprep.subr.mxu0 %v3569_v53  ;;  %v1103_v13 = vcvt.s32.f32 %v1087_v8  ;;  %v1469_v14 = vand.u32 15, %v1453_v9  ;;  %v1520_v8 = vrot.slane %v4277_v10, %v4181_v49  ;;  %v1444_v9 = vshra.s32 %v4232_v24, 8 }
  0xad   : > { %3074 = vmatprep.subr.mxu1 %v3569_v53  ;;  %3062 = vmatpush3.msra.mxu0 %v991_v11  ;;  %v1478_v11 = vcvt.s32.f32 %v1462_v5  ;;  %v1837_v5 = vand.u32 15, %v1821_v1 }
  0xae   : > { %3075 = vmatpush3.msra.mxu1 %v1176_v15  ;;  %3063 = vmatprep.mubr.msk.f32.mxu0 %vm3570_vm0, %v3569_v53  ;;  %v1165_v15 = vmul.f32 %v1148_v56, %v1103_v13  ;;  %v1485_v16 = vcvt.s32.f32 %v1469_v14  ;;  %v1524_v56 = vrot.slane %v1511_v44, %v4181_v49  ;;  %v1477_v13 = vcvt.s32.f32 %v1461_v7 }
  0xaf   : > { %3076 = vmatprep.subr.mxu1 %v3569_v53  ;;  %3101 = vmatprep.subr.mxu0 %v3569_v53  ;;  %v1460_v14 = vand.u32 15, %v1444_v9 }
  0xb0   : > { %3077 = vmatpush3.msra.mxu1 %v1175_v17  ;;  %3098 = vmatprep.mubr.msk.f32.mxu1 %vm3570_vm0, %v3569_v53  ;;  %v1512_v17 = vcombine.high %v4277_v10, %v4277_v10 }
  0xb1   : > { %3078 = vmatprep.subr.mxu1 %v3569_v53 }
  0xb2   : > { %3079 = vmatpush3.msra.mxu1 %v1174_v19  ;;  %v1452_v19 = vshra.s32 %v4184_v50, 8  ;;  %v1528_v22 = vrot.slane %v1512_v17, %v4181_v49  ;;  %v1476_v17 = vcvt.s32.f32 %v1460_v14  ;;  %v1818_v14 = vshra.s32 %v4197_v57, 16 }
  0xb3   : > { %3080 = vmatprep.subr.mxu1 %v3569_v53 }
  0xb4   : > { %3081 = vmatpush3.msra.mxu1 %v1173_v25  ;;  %v1468_v23 = vand.u32 15, %v1452_v19  ;;  %v1467_v25 = vand.u32 15, %v1451_v20  ;;  %v1548_v26 = vmul.f32 %v1528_v22, %v1485_v16  ;;  %v1540_v16 = vmul.f32 %v1520_v8, %v1477_v13 }
  0xb5   : > { %3082 = vmatprep.subr.mxu1 %v3569_v53  ;;  %v1443_v19 = vshra.s32 %v4238_v29, 8  ;;  %v1442_v20 = vshra.s32 %v4243_v35, 8  ;;  %v1539_v10 = vmul.f32 %v1520_v8, %v1476_v17  ;;  %v1834_v17 = vand.u32 15, %v1818_v14 }
  0xb6   : > { %3083 = vmatpush3.msra.mxu1 %v1172_v30  ;;  %v1484_v27 = vcvt.s32.f32 %v1468_v23  ;;  %v1483_v28 = vcvt.s32.f32 %v1467_v25  ;;  %v1441_v25 = vshra.s32 %v4248_v43, 8  ;;  %v1809_v14 = vshra.s32 %v4248_v43, 16 }
  0xb7   : > { %3084 = vmatprep.subr.mxu1 %v3569_v53  ;;  %v1458_v23 = vand.u32 15, %v1442_v20 }
  0xb8   : > { %3085 = vmatpush3.msra.mxu1 %v1171_v36  ;;  %v1547_v30 = vmul.f32 %v1528_v22, %v1484_v27  ;;  %v1546_v33 = vmul.f32 %v1528_v22, %v1483_v28  ;;  %v1449_v36 = vshra.s32 %v4200_v58, 8  ;;  %v1457_v28 = vand.u32 15, %v1441_v25 }
  0xb9   : > { %3086 = vmatprep.subr.mxu1 %v3569_v53  ;;  %v1474_v27 = vcvt.s32.f32 %v1458_v23 }
  0xba   : > { %3087 = vmatpush3.msra.mxu1 %v1170_v41  ;;  %v1482_v41 = vcvt.s32.f32 %v1466_v39  ;;  %v1465_v42 = vand.u32 15, %v1449_v36  ;;  %v1473_v36 = vcvt.s32.f32 %v1457_v28  ;;  %v1440_v39 = vshra.s32 %v4253_v48, 8 }
  0xbb   : > { %3088 = vmatprep.subr.mxu1 %v3569_v53  ;;  %v1537_v34 = vmul.f32 %v1520_v8, %v1474_v27  ;;  %v1816_v27 = vshra.s32 %v4205_v63, 16 }
  0xbc   : > { %3089 = vmatpush3.msra.mxu1 %v1169_v45  ;;  %v1545_v54 = vmul.f32 %v1528_v22, %v1482_v41  ;;  %v1481_v55 = vcvt.s32.f32 %v1465_v42  ;;  %v1459_v22 = vand.u32 15, %v1443_v19  ;;  %v1438_v41 = vshra.s32 %v4269_v52, 8 }
  0xbd   : > { %3090 = vmatprep.subr.mxu1 %v3569_v53  ;;  %v1456_v44 = vand.u32 15, %v1440_v39  ;;  %v1817_v19 = vshra.s32 %v4200_v58, 16 }
  0xbe   : > { %3091 = vmatpush3.msra.mxu1 %v1168_v0  ;;  %v1544_v62 = vmul.f32 %v1524_v56, %v1481_v55 }
  0xbf   : > { %3092 = vmatprep.subr.mxu1 %v3569_v53  ;;  %v1833_v23 = vand.u32 15, %v1817_v19  ;;  %v1808_v19 = vshra.s32 %v4253_v48, 16 }
  0xc0   : > { %3093 = vmatpush3.msra.mxu1 %v1167_v6  ;;  %v1479_v6 = vcvt.s32.f32 %v1463_v2 }
  0xc1   : > { %3094 = vmatprep.subr.mxu1 %v3569_v53  ;;  %v1849_v28 = vcvt.s32.f32 %v1833_v23  ;;  %v1824_v23 = vand.u32 15, %v1808_v19 }
  0xc2   : > { %3095 = vmatpush3.msra.mxu1 %v1166_v12  ;;  %v1542_v12 = vmul.f32 %v1524_v56, %v1479_v6  ;;  %v1819_v6 = vshra.s32 %v4187_v51, 16 }
  0xc3   : > { %3096 = vmatprep.subr.mxu1 %v3569_v53 }
  0xc4   : > { %3097 = vmatpush3.msra.mxu1 %v1165_v15  ;;  %v1541_v15 = vmul.f32 %v1524_v56, %v1478_v11  ;;  %v1835_v9 = vand.u32 15, %v1819_v6  ;;  %v1853_v11 = vcvt.s32.f32 %v1837_v5  ;;  %v1810_v5 = vshra.s32 %v4243_v35, 16 }
  0xc5   : > { %3136 = vmatprep.subr.mxu1 %v3569_v53  ;;  %3099 = vmatmul.mubr.f32.vlgmr.msra.gmra.mxu1 %v3965_v31  ;;  %v1448_v31 = vshra.s32 %v4205_v63, 8 }
  0xc6   : > { %3168 = vmatprep.mubr.msk.f32.mxu1 %vm3570_vm0, %v3569_v53  ;;  %3137 = vmatpush3.msra.mxu1 %v1548_v26  ;;  %v1475_v26 = vcvt.s32.f32 %v1459_v22  ;;  %v1850_v22 = vcvt.s32.f32 %v1834_v17 }
  0xc7   : > { %3138 = vmatprep.subr.mxu1 %v3569_v53  ;;  %v1464_v45 = vand.u32 15, %v1448_v31  ;;  %v1439_v31 = vshra.s32 %v4261_v60, 8 }
  0xc8   : > { %3139 = vmatpush3.msra.mxu1 %v1547_v30  ;;  %v1516_v30 = vrot.slane %v1503_v40, %v4181_v49  ;;  %v1454_v40 = vand.u32 15, %v1438_v41 }
  0xc9   : > { %3140 = vmatprep.subr.mxu1 %v3569_v53  ;;  %v1480_v59 = vcvt.s32.f32 %v1464_v45  ;;  %v1455_v45 = vand.u32 15, %v1439_v31  ;;  %v1814_v31 = vshra.s32 %v4222_v18, 16 }
  0xca   : > { %3141 = vmatpush3.msra.mxu1 %v1546_v33  ;;  %v1538_v33 = vmul.f32 %v1520_v8, %v1475_v26  ;;  %v1536_v42 = vmul.f32 %v1516_v30, %v1473_v36  ;;  %v1836_v8 = vand.u32 15, %v1820_v3  ;;  %v1832_v36 = vand.u32 15, %v1816_v27 }
  0xcb   : > { %3142 = vmatprep.subr.mxu1 %v3569_v53  ;;  %v1543_v0 = vmul.f32 %v1524_v56, %v1480_v59  ;;  %v1471_v55 = vcvt.s32.f32 %v1455_v45  ;;  %v1470_v56 = vcvt.s32.f32 %v1454_v40  ;;  %v1830_v45 = vand.u32 15, %v1814_v31 }
  0xcc   : > { %3143 = vmatpush3.msra.mxu1 %v1545_v54  ;;  %v1472_v54 = vcvt.s32.f32 %v1456_v44  ;;  %v1852_v13 = vcvt.s32.f32 %v1836_v8  ;;  %v2189_v31 = vshra.s32 %v4178_v47, 24 }
  0xcd   : > { %3144 = vmatprep.subr.mxu1 %v3569_v53  ;;  %v1533_v61 = vmul.f32 %v1516_v30, %v1470_v56 }
  0xce   : > { %3145 = vmatpush3.msra.mxu1 %v1544_v62  ;;  %v1535_v59 = vmul.f32 %v1516_v30, %v1472_v54  ;;  %v2742_v62 = vld.sshfl [vmem:[%s3764_s3 + $0x10] sm:$0x33 pattern:$0x75316420]  ;;  %v1846_v54 = vcvt.s32.f32 %v1830_v45  ;;  %v2205_v45 = vand.u32 15, %v2189_v31 }
  0xcf   : > { %3146 = vmatprep.subr.mxu1 %v3569_v53  ;;  %v1864_v2 = vcombine.high %v2742_v62, %v2742_v62 }
  0xd0   : > { %3147 = vmatpush3.msra.mxu1 %v1543_v0  ;;  %v1534_v0 = vmul.f32 %v1516_v30, %v1471_v55  ;;  %v1815_v30 = vshra.s32 %v4212_v4, 16  ;;  %v1813_v55 = vshra.s32 %v4227_v21, 16 }
  0xd1   : > { %3148 = vmatprep.subr.mxu1 %v3569_v53  ;;  %v1878_v7 = vrot.slane %v1864_v2, %v4175_v46  ;;  %v1811_v2 = vshra.s32 %v4238_v29, 16 }
  0xd2   : > { %3149 = vmatpush3.msra.mxu1 %v1542_v12  ;;  %v1831_v39 = vand.u32 15, %v1815_v30 }
  0xd3   : > { %3150 = vmatprep.subr.mxu1 %v3569_v53  ;;  %v1880_v12 = vcombine.high %v1878_v7, %v1878_v7  ;;  %v1827_v8 = vand.u32 15, %v1811_v2 }
  0xd4   : > { %3151 = vmatpush3.msra.mxu1 %v1541_v15  ;;  %v1847_v44 = vcvt.s32.f32 %v1831_v39 }
  0xd5   : > { %3152 = vmatprep.subr.mxu1 %v3569_v53  ;;  %v1896_v15 = vrot.slane %v1880_v12, %v4181_v49 }
  0xd6   : > { %3153 = vmatpush3.msra.mxu1 %v1540_v16  ;;  %v1851_v16 = vcvt.s32.f32 %v1835_v9 }
  0xd7   : > { %3154 = vmatprep.subr.mxu1 %v3569_v53  ;;  %v1916_v20 = vmul.f32 %v1896_v15, %v1853_v11  ;;  %v1826_v11 = vand.u32 15, %v1810_v5 }
  0xd8   : > { %3155 = vmatpush3.msra.mxu1 %v1539_v10  ;;  %v1915_v10 = vmul.f32 %v1896_v15, %v1852_v13  ;;  %v1914_v25 = vmul.f32 %v1896_v15, %v1851_v16  ;;  %v1825_v16 = vand.u32 15, %v1809_v14 }
  0xd9   : > { %3156 = vmatprep.subr.mxu1 %v3569_v53  ;;  %v1842_v13 = vcvt.s32.f32 %v1826_v11  ;;  %v2184_v11 = vshra.s32 %v4205_v63, 24 }
  0xda   : > { %3157 = vmatpush3.msra.mxu1 %v1538_v33  ;;  %v1913_v33 = vmul.f32 %v1896_v15, %v1850_v22  ;;  %v1841_v22 = vcvt.s32.f32 %v1825_v16 }
  0xdb   : > { %3158 = vmatprep.subr.mxu1 %v3569_v53  ;;  %v2200_v14 = vand.u32 15, %v2184_v11  ;;  %v2174_v11 = vshra.s32 %v4269_v52, 24 }
  0xdc   : > { %3159 = vmatpush3.msra.mxu1 %v1537_v34 }
  0xdd   : > { %3160 = vmatprep.subr.mxu1 %v3569_v53  ;;  %v2216_v19 = vcvt.s32.f32 %v2200_v14  ;;  %v2190_v14 = vand.u32 15, %v2174_v11 }
  0xde   : > { %3161 = vmatpush3.msra.mxu1 %v1536_v42  ;;  %v1848_v42 = vcvt.s32.f32 %v1832_v36 }
  0xdf   : > { %3162 = vmatprep.subr.mxu1 %v3569_v53 }
  0xe0   : > { %3163 = vmatpush3.msra.mxu1 %v1535_v59  ;;  %v1812_v59 = vshra.s32 %v4232_v24, 16 }
  0xe1   : > { %3164 = vmatprep.subr.mxu1 %v3569_v53 }
  0xe2   : > { %3165 = vmatpush3.msra.mxu1 %v1534_v0  ;;  %v1888_v0 = vrot.slane %v1878_v7, %v4181_v49  ;;  %v1828_v1 = vand.u32 15, %v1812_v59  ;;  %v1843_v7 = vcvt.s32.f32 %v1827_v8  ;;  %v2187_v59 = vshra.s32 %v4187_v51, 24 }
  0xe3   : > { %3166 = vmatprep.subr.mxu1 %v3569_v53  ;;  %v2185_v8 = vshra.s32 %v4200_v58, 24 }
  0xe4   : > { %3167 = vmatpush3.msra.mxu1 %v1533_v61  ;;  %v1844_v6 = vcvt.s32.f32 %v1828_v1  ;;  %v1906_v15 = vmul.f32 %v1888_v0, %v1843_v7  ;;  %v2186_v1 = vshra.s32 %v4197_v57, 24 }
  0xe5   : > { %3169 = vmatmul.mubr.f32.vlgmr.msra.gmra.mxu1 %v3968_v32  ;;  %3206 = vmatprep.subr.mxu1 %v3569_v53  ;;  %v1871_v32 = vrot.slane %v2742_v62, %v4175_v46  ;;  %v1829_v62 = vand.u32 15, %v1813_v55  ;;  %v2221_v55 = vcvt.s32.f32 %v2205_v45  ;;  %v2201_v7 = vand.u32 15, %v2185_v8 }
  0xe6   : > { %3238 = vmatprep.mubr.msk.f32.mxu1 %vm3570_vm0, %v3569_v53  ;;  %3207 = vmatpush3.msra.mxu1 %v1916_v20  ;;  %v1907_v12 = vmul.f32 %v1888_v0, %v1844_v6  ;;  %v1905_v20 = vmul.f32 %v1888_v0, %v1842_v13  ;;  %v2202_v6 = vand.u32 15, %v2186_v1  ;;  %v2175_v8 = vshra.s32 %v4261_v60, 24 }
  0xe7   : > { %v1879_v26 = vcombine.high %v1871_v32, %v1871_v32  ;;  %3208 = vmatprep.subr.mxu1 %v3569_v53  ;;  %v1845_v3 = vcvt.s32.f32 %v1829_v62  ;;  %v1884_v17 = vrot.slane %v1871_v32, %v4181_v49  ;;  %v2217_v16 = vcvt.s32.f32 %v2201_v7 }
  0xe8   : > { %3209 = vmatpush3.msra.mxu1 %v1915_v10  ;;  %v1807_v10 = vshra.s32 %v4261_v60, 16 }
  0xe9   : > { %v1892_v34 = vrot.slane %v1879_v26, %v4181_v49  ;;  %3210 = vmatprep.subr.mxu1 %v3569_v53  ;;  %v1908_v9 = vmul.f32 %v1888_v0, %v1845_v3  ;;  %v1904_v27 = vmul.f32 %v1884_v17, %v1841_v22 }
  0xea   : > { %3211 = vmatpush3.msra.mxu1 %v1914_v25  ;;  %v1806_v25 = vshra.s32 %v4269_v52, 16  ;;  %v1823_v26 = vand.u32 15, %v1807_v10 }
  0xeb   : > { %v1912_v41 = vmul.f32 %v1892_v34, %v1849_v28  ;;  %3212 = vmatprep.subr.mxu1 %v3569_v53  ;;  %v1911_v40 = vmul.f32 %v1892_v34, %v1848_v42  ;;  %v1910_v56 = vmul.f32 %v1892_v34, %v1847_v44  ;;  %v1909_v61 = vmul.f32 %v1892_v34, %v1846_v54 }
  0xec   : > { %3213 = vmatpush3.msra.mxu1 %v1913_v33  ;;  %v1840_v28 = vcvt.s32.f32 %v1824_v23  ;;  %v1822_v32 = vand.u32 15, %v1806_v25  ;;  %v1839_v30 = vcvt.s32.f32 %v1823_v26  ;;  %v2746_v33 = vld.sshfl [vmem:[%s3764_s3 + $0x18] sm:$0x33 pattern:$0x75316420]  ;;  %v2188_v44 = vshra.s32 %v4184_v50, 24 }
  0xed   : > { %3214 = vmatprep.subr.mxu1 %v3569_v53  ;;  %v2182_v25 = vshra.s32 %v4222_v18, 24  ;;  %v2181_v26 = vshra.s32 %v4227_v21, 24 }
  0xee   : > { %3215 = vmatpush3.msra.mxu1 %v1912_v41  ;;  %v1903_v34 = vmul.f32 %v1884_v17, %v1840_v28  ;;  %v1838_v36 = vcvt.s32.f32 %v1822_v32  ;;  %v1902_v39 = vmul.f32 %v1884_v17, %v1839_v30  ;;  %v2232_v41 = vcombine.high %v2746_v33, %v2746_v33 }
  0xef   : > { %3216 = vmatprep.subr.mxu1 %v3569_v53  ;;  %v2204_v54 = vand.u32 15, %v2188_v44  ;;  %v2198_v28 = vand.u32 15, %v2182_v25  ;;  %v2197_v32 = vand.u32 15, %v2181_v26 }
  0xf0   : > { %3217 = vmatpush3.msra.mxu1 %v1911_v40  ;;  %v1901_v42 = vmul.f32 %v1884_v17, %v1838_v36  ;;  %v2246_v40 = vrot.slane %v2232_v41, %v4175_v46  ;;  %v2179_v41 = vshra.s32 %v4238_v29, 24 }
  0xf1   : > { %3218 = vmatprep.subr.mxu1 %v3569_v53  ;;  %v2220_v62 = vcvt.s32.f32 %v2204_v54  ;;  %v2214_v36 = vcvt.s32.f32 %v2198_v28 }
  0xf2   : > { %3219 = vmatpush3.msra.mxu1 %v1910_v56  ;;  %v2248_v56 = vcombine.high %v2246_v40, %v2246_v40  ;;  %v2256_v30 = vrot.slane %v2246_v40, %v4181_v49 }
  0xf3   : > { %3220 = vmatprep.subr.mxu1 %v3569_v53 }
  0xf4   : > { %3221 = vmatpush3.msra.mxu1 %v1909_v61  ;;  %v2264_v0 = vrot.slane %v2248_v56, %v4181_v49  ;;  %v2203_v61 = vand.u32 15, %v2187_v59  ;;  %v2177_v59 = vshra.s32 %v4248_v43, 24 }
  0xf5   : > { %3222 = vmatprep.subr.mxu1 %v3569_v53 }
  0xf6   : > { %3223 = vmatpush3.msra.mxu1 %v1908_v9  ;;  %v2284_v2 = vmul.f32 %v2264_v0, %v2221_v55  ;;  %v2283_v3 = vmul.f32 %v2264_v0, %v2220_v62  ;;  %v2219_v5 = vcvt.s32.f32 %v2203_v61  ;;  %v2195_v55 = vand.u32 15, %v2179_v41 }
  0xf7   : > { %3224 = vmatprep.subr.mxu1 %v3569_v53  ;;  %v2193_v61 = vand.u32 15, %v2177_v59 }
  0xf8   : > { %3225 = vmatpush3.msra.mxu1 %v1907_v12  ;;  %v2282_v9 = vmul.f32 %v2264_v0, %v2219_v5  ;;  %v2218_v12 = vcvt.s32.f32 %v2202_v6  ;;  %v2211_v62 = vcvt.s32.f32 %v2195_v55 }
  0xf9   : > { %3226 = vmatprep.subr.mxu1 %v3569_v53  ;;  %v2209_v6 = vcvt.s32.f32 %v2193_v61 }
  0xfa   : > { %3227 = vmatpush3.msra.mxu1 %v1906_v15  ;;  %v2281_v15 = vmul.f32 %v2264_v0, %v2218_v12  ;;  %v2736_v12 = vld.sshfl [vmem:[%s3764_s3 + $0x4] sm:$0x33 pattern:$0x75316420] }
  0xfb   : > { %3228 = vmatprep.subr.mxu1 %v3569_v53 }
  0xfc   : > { %3229 = vmatpush3.msra.mxu1 %v1905_v20  ;;  %v2183_v20 = vshra.s32 %v4212_v4, 24 }
  0xfd   : > { %3230 = vmatprep.subr.mxu1 %v3569_v53 }
  0xfe   : > { %3231 = vmatpush3.msra.mxu1 %v1904_v27  ;;  %v2199_v23 = vand.u32 15, %v2183_v20 }
  0xff   : > { %3232 = vmatprep.subr.mxu1 %v3569_v53 }
 0x100   : > { %3233 = vmatpush3.msra.mxu1 %v1903_v34  ;;  %v2215_v27 = vcvt.s32.f32 %v2199_v23  ;;  %v1269_v23 = vshra.s32 %v4178_v47, 4  ;;  %v1267_v47 = vshra.s32 %v4187_v51, 4 }
 0x101   : > { %3234 = vmatprep.subr.mxu1 %v3569_v53 }
 0x102   : > { %3235 = vmatpush3.msra.mxu1 %v1902_v39  ;;  %v2213_v39 = vcvt.s32.f32 %v2197_v32  ;;  %v1268_v32 = vshra.s32 %v4184_v50, 4  ;;  %v1283_v55 = vand.u32 15, %v1267_v47 }
 0x103   : > { %3236 = vmatprep.subr.mxu1 %v3569_v53 }
 0x104   : > { %3237 = vmatpush3.msra.mxu1 %v1901_v42  ;;  %v2178_v42 = vshra.s32 %v4243_v35, 24  ;;  %v2276_v45 = vmul.f32 %v2256_v30, %v2213_v39  ;;  %v1284_v41 = vand.u32 15, %v1268_v32 }
 0x105   : > { %3239 = vmatmul.mubr.f32.vlgmr.msra.gmra.mxu1 %v4167_v37  ;;  %3276 = vmatprep.subr.mxu1 %v3569_v53  ;;  %v2239_v37 = vrot.slane %v2746_v33, %v4175_v46  ;;  %v2180_v33 = vshra.s32 %v4232_v24, 24 }
 0x106   : > { %3308 = vmatprep.mubr.msk.f32.mxu1 %vm3570_vm0, %v3569_v53  ;;  %3277 = vmatpush3.msra.mxu1 %v2284_v2  ;;  %v2194_v40 = vand.u32 15, %v2178_v42  ;;  %v2274_v2 = vmul.f32 %v2256_v30, %v2211_v62  ;;  %v1266_v42 = vshra.s32 %v4197_v57, 4  ;;  %v1300_v59 = vcvt.s32.f32 %v1284_v41 }
 0x107   : > { %3278 = vmatprep.subr.mxu1 %v3569_v53  ;;  %v2247_v13 = vcombine.high %v2239_v37, %v2239_v37  ;;  %v2196_v31 = vand.u32 15, %v2180_v33  ;;  %v2252_v1 = vrot.slane %v2239_v37, %v4181_v49  ;;  %v1263_v57 = vshra.s32 %v4212_v4, 4 }
 0x108   : > { %3279 = vmatpush3.msra.mxu1 %v2283_v3  ;;  %v2210_v0 = vcvt.s32.f32 %v2194_v40  ;;  %v2176_v3 = vshra.s32 %v4253_v48, 24  ;;  %v1265_v40 = vshra.s32 %v4200_v58, 4  ;;  %v1282_v62 = vand.u32 15, %v1266_v42 }
 0x109   : > { %3280 = vmatprep.subr.mxu1 %v3569_v53  ;;  %v2260_v17 = vrot.slane %v2247_v13, %v4181_v49  ;;  %v2212_v54 = vcvt.s32.f32 %v2196_v31  ;;  %v2272_v7 = vmul.f32 %v2252_v1, %v2209_v6  ;;  %v2191_v13 = vand.u32 15, %v2175_v8 }
 0x10a   : > { %3281 = vmatpush3.msra.mxu1 %v2282_v9  ;;  %v2273_v5 = vmul.f32 %v2256_v30, %v2210_v0  ;;  %v2192_v9 = vand.u32 15, %v2176_v3  ;;  %v1264_v0 = vshra.s32 %v4205_v63, 4  ;;  %v1299_v3 = vcvt.s32.f32 %v1283_v55 }
 0x10b   : > { %3282 = vmatprep.subr.mxu1 %v3569_v53  ;;  %v2280_v10 = vmul.f32 %v2260_v17, %v2217_v16  ;;  %v2279_v22 = vmul.f32 %v2260_v17, %v2216_v19  ;;  %v2278_v34 = vmul.f32 %v2260_v17, %v2215_v27  ;;  %v2277_v44 = vmul.f32 %v2260_v17, %v2214_v36 }
 0x10c   : > { %3283 = vmatpush3.msra.mxu1 %v2281_v15  ;;  %v2275_v56 = vmul.f32 %v2256_v30, %v2212_v54  ;;  %v2208_v37 = vcvt.s32.f32 %v2192_v9  ;;  %v2207_v15 = vcvt.s32.f32 %v2191_v13  ;;  %v1312_v16 = vcombine.high %v2736_v12, %v2736_v12 }
 0x10d   : > { %3284 = vmatprep.subr.mxu1 %v3569_v53  ;;  %v2206_v19 = vcvt.s32.f32 %v2190_v14  ;;  %v1285_v30 = vand.u32 15, %v1269_v23  ;;  %v1298_v9 = vcvt.s32.f32 %v1282_v62  ;;  %v1280_v11 = vand.u32 15, %v1264_v0  ;;  %v4468_v62 = vld [vmem:[%s3762_s14 + $0x70] sm:$0xff] }
 0x10e   : > { %3285 = vmatpush3.msra.mxu1 %v2280_v10  ;;  %v2271_v17 = vmul.f32 %v2252_v1, %v2208_v37  ;;  %v2270_v20 = vmul.f32 %v2252_v1, %v2207_v15  ;;  %v4415_v26 = vrot.slane %v1312_v16, %v4175_v46  ;;  %v1261_v4 = vshra.s32 %v4227_v21, 4 }
 0x10f   : > { %3286 = vmatprep.subr.mxu1 %v3569_v53  ;;  %v2269_v25 = vmul.f32 %v2252_v1, %v2206_v19  ;;  %v1296_v15 = vcvt.s32.f32 %v1280_v11  ;;  %v1259_v21 = vshra.s32 %v4238_v29, 4  ;;  %v2740_v29 = vld.sshfl [vmem:[%s3764_s3 + $0xc] sm:$0x33 pattern:$0x75316420]  ;;  %v1636_v0 = vshra.s32 %v4468_v62, 12 }
 0x110   : > { %3287 = vmatpush3.msra.mxu1 %v2279_v22  ;;  %v1328_v33 = vcombine.high %v4415_v26, %v4415_v26  ;;  %v1680_v41 = vcombine.high %v2740_v29, %v2740_v29 }
 0x111   : > { %3288 = vmatprep.subr.mxu1 %v3569_v53  ;;  %v1275_v32 = vand.u32 15, %v1259_v21 }
 0x112   : > { %3289 = vmatpush3.msra.mxu1 %v2278_v34  ;;  %v1344_v54 = vrot.slane %v1328_v33, %v4181_v49 }
 0x113   : > { %3290 = vmatprep.subr.mxu1 %v3569_v53 }
 0x114   : > { %3291 = vmatpush3.msra.mxu1 %v2277_v44  ;;  %v1301_v44 = vcvt.s32.f32 %v1285_v30  ;;  %v1363_v8 = vmul.f32 %v1344_v54, %v1300_v59  ;;  %v1362_v63 = vmul.f32 %v1344_v54, %v1299_v3  ;;  %v1361_v14 = vmul.f32 %v1344_v54, %v1298_v9 }
 0x115   : > { %3292 = vmatprep.subr.mxu1 %v3569_v53  ;;  %v1257_v30 = vshra.s32 %v4248_v43, 4 }
 0x116   : > { %3293 = vmatpush3.msra.mxu1 %v2276_v45 }
 0x117   : > { %3294 = vmatprep.subr.mxu1 %v3569_v53 }
 0x118   : > { %3295 = vmatpush3.msra.mxu1 %v2275_v56  ;;  %v4428_v56 = vrot.slane %v2736_v12, %v4175_v46  ;;  %v1262_v12 = vshra.s32 %v4222_v18, 4  ;;  %v1260_v18 = vshra.s32 %v4232_v24, 4 }
 0x119   : > { %3296 = vmatprep.subr.mxu1 %v3569_v53 }
 0x11a   : > { %3297 = vmatpush3.msra.mxu1 %v2274_v2  ;;  %v1364_v2 = vmul.f32 %v1344_v54, %v1301_v44  ;;  %v1327_v58 = vcombine.high %v4428_v56, %v4428_v56  ;;  %v1278_v16 = vand.u32 15, %v1262_v12  ;;  %v1276_v23 = vand.u32 15, %v1260_v18  ;;  %v4494_v18 = vld [vmem:[%s3762_s14 + $0x50] sm:$0xff] }
 0x11b   : > { %3298 = vmatprep.subr.mxu1 %v3569_v53 }
 0x11c   : > { %3299 = vmatpush3.msra.mxu1 %v2273_v5  ;;  %v1281_v5 = vand.u32 15, %v1265_v40  ;;  %v1340_v37 = vrot.slane %v1327_v58, %v4181_v49  ;;  %v1292_v47 = vcvt.s32.f32 %v1276_v23  ;;  %v1332_v40 = vrot.slane %v4428_v56, %v4181_v49 }
 0x11d   : > { %3300 = vmatprep.subr.mxu1 %v3569_v53 }
 0x11e   : > { %3301 = vmatpush3.msra.mxu1 %v2272_v7  ;;  %v1279_v7 = vand.u32 15, %v1263_v57  ;;  %v1297_v13 = vcvt.s32.f32 %v1281_v5 }
 0x11f   : > { %3302 = vmatprep.subr.mxu1 %v3569_v53 }
 0x120   : > { %3303 = vmatpush3.msra.mxu1 %v2271_v17  ;;  %v1295_v17 = vcvt.s32.f32 %v1279_v7  ;;  %v1360_v19 = vmul.f32 %v1340_v37, %v1297_v13  ;;  %v4486_v13 = vld [vmem:[%s3762_s14 + $0x58] sm:$0xff] }
 0x121   : > { %3304 = vmatprep.subr.mxu1 %v3569_v53 }
 0x122   : > { %3305 = vmatpush3.msra.mxu1 %v2270_v20  ;;  %v1277_v20 = vand.u32 15, %v1261_v4  ;;  %v1358_v24 = vmul.f32 %v1340_v37, %v1295_v17  ;;  %v4490_v4 = vrot.slane %v2740_v29, %v4175_v46  ;;  %v1632_v17 = vshra.s32 %v4494_v18, 12 }
 0x123   : > { %3306 = vmatprep.subr.mxu1 %v3569_v53 }
 0x124   : > { %3307 = vmatpush3.msra.mxu1 %v2269_v25  ;;  %v1258_v25 = vshra.s32 %v4243_v35, 4  ;;  %v1256_v35 = vshra.s32 %v4253_v48, 4  ;;  %v1695_v23 = vcombine.high %v4490_v4, %v4490_v4 }
 0x125   : > { %3309 = vmatmul.mubr.f32.vlgmr.msra.gmra.mxu1 %v4170_v38 }
 0x126   : > { %v1272_v44 = vand.u32 15, %v1256_v35  ;;  %v4513_v35 = vld [vmem:[%s3762_s14 + $0x38] sm:$0xff] }
 0x142   : > { %v2806_v10 = vpop.f32.mrf.mxu0 }
 0x143   : > { %v2841_v22 = vpop.f32.mrf.mxu1 }
 0x144   : > { %v2807_v27 = vpop.f32.mrf.mxu0 }
 0x145   : > { %v2842_v28 = vpop.f32.mrf.mxu1  ;;  %v2808_v34 = vadd.f32 %v2807_v27, %v2806_v10  ;;  %v1359_v10 = vmul.f32 %v1340_v37, %v1296_v15  ;;  %v1293_v27 = vcvt.s32.f32 %v1277_v20 }
 0x146   : > { %v2843_v36 = vadd.f32 %v2842_v28, %v2841_v22  ;;  %v1294_v22 = vcvt.s32.f32 %v1278_v16  ;;  %v1336_v28 = vrot.slane %v4415_v26, %v4181_v49  ;;  %v1291_v26 = vcvt.s32.f32 %v1275_v32 }
 0x148   : > { %v847_v51 = vadd.f32 %v2843_v36, %v2808_v34  ;;  %v1357_v33 = vmul.f32 %v1340_v37, %v1294_v22  ;;  %v1274_v34 = vand.u32 15, %v1258_v25  ;;  %v1255_v36 = vshra.s32 %v4261_v60, 4 }
 0x149   : > { %v1355_v43 = vmul.f32 %v1336_v28, %v1292_v47  ;;  %v1354_v54 = vmul.f32 %v1336_v28, %v1291_v26  ;;  %v1633_v37 = vshra.s32 %v4486_v13, 12 }
 0x14a   : > { %v1290_v42 = vcvt.s32.f32 %v1274_v34  ;;  %v1271_v48 = vand.u32 15, %v1255_v36  ;;  %v1708_v34 = vrot.slane %v1695_v23, %v4181_v49  ;;  %v1629_v36 = vshra.s32 %v4513_v35, 12 }
 0x14b   : > { %v1649_v22 = vand.u32 15, %v1633_v37 }
 0x14d   : > { %v1665_v47 = vcvt.s32.f32 %v1649_v22 }
 0x164   : > { %v2876_v39 = vpop.f32.mrf.mxu0 }
 0x165   : > { %v2911_v31 = vpop.f32.mrf.mxu1 }
 0x166   : > { %v2877_v50 = vpop.f32.mrf.mxu0 }
 0x167   : > { %v2912_v45 = vpop.f32.mrf.mxu1  ;;  %v2878_v38 = vadd.f32 %v2877_v50, %v2876_v39  ;;  %v1356_v39 = vmul.f32 %v1336_v28, %v1293_v27  ;;  %v1254_v50 = vshra.s32 %v4269_v52, 4  ;;  %v1353_v52 = vmul.f32 %v1336_v28, %v1290_v42  ;;  %v4506_v28 = vld [vmem:[%s3762_s14 + $0x40] sm:$0xff] }
 0x168   : > { %v2913_v1 = vadd.f32 %v2912_v45, %v2911_v31  ;;  %v1273_v31 = vand.u32 15, %v1257_v30  ;;  %v4458_v45 = vld [vmem:[%s3762_s14 + $0x78] sm:$0xff]  ;;  %v1648_v27 = vand.u32 15, %v1632_v17  ;;  %v1630_v32 = vshra.s32 %v4506_v28, 12  ;;  %v3445_v30 = vld [vmem:[%s3756_s1 + $0x8] sm:$0xff] }
 0x169   : > { %v917_v61 = vadd.f32 %v2878_v38, %v847_v51  ;;  %v1637_v60 = vshra.s32 %v4458_v45, 12  ;;  %v4464_v51 = vrot.slane %v1680_v41, %v4175_v46  ;;  %v1288_v38 = vcvt.s32.f32 %v1272_v44  ;;  %v4520_v41 = vld [vmem:[%s3762_s14 + $0x30] sm:$0xff] }
 0x16a   : > { %v1289_v55 = vcvt.s32.f32 %v1273_v31  ;;  %v1270_v59 = vand.u32 15, %v1254_v50  ;;  %v1664_v26 = vcvt.s32.f32 %v1648_v27  ;;  %v1646_v31 = vand.u32 15, %v1630_v32 }
 0x16b   : > { %v987_v6 = vadd.f32 %v2913_v1, %v917_v61  ;;  %v1287_v61 = vcvt.s32.f32 %v1271_v48  ;;  %v1653_v1 = vand.u32 15, %v1637_v60  ;;  %v1696_v57 = vcombine.high %v4464_v51, %v4464_v51  ;;  %v4525_v48 = vld [vmem:[%s3762_s14 + $0x28] sm:$0xff] }
 0x16c   : > { %v1352_v56 = vmul.f32 %v1332_v40, %v1289_v55  ;;  %v1351_v5 = vmul.f32 %v1332_v40, %v1288_v38  ;;  %v1286_v58 = vcvt.s32.f32 %v1270_v59  ;;  %v1728_v44 = vmul.f32 %v1708_v34, %v1665_v47 }
 0x16d   : > { %3064 = vmatmul.mubr.msk.f32.vlgmr.msra.gmra.mxu0 %vm995_vm1, %v987_v6  ;;  %v1652_v6 = vand.u32 15, %v1636_v0  ;;  %v1350_v11 = vmul.f32 %v1332_v40, %v1287_v61  ;;  %v1669_v12 = vcvt.s32.f32 %v1653_v1  ;;  %v1712_v7 = vrot.slane %v1696_v57, %v4181_v49 }
 0x16e   : > { %3102 = vmatpush3.msra.mxu0 %v1364_v2  ;;  %3133 = vmatprep.mubr.msk.f32.mxu0 %vm3570_vm0, %v3569_v53  ;;  %v4475_v2 = vld [vmem:[%s3762_s14 + $0x68] sm:$0xff]  ;;  %v1645_v50 = vand.u32 15, %v1629_v36  ;;  %v1627_v60 = vshra.s32 %v4525_v48, 12  ;;  %v1662_v55 = vcvt.s32.f32 %v1646_v31  ;;  %v1704_v61 = vrot.slane %v4464_v51, %v4181_v49 }
 0x16f   : > { %3103 = vmatprep.subr.mxu0 %v3569_v53  ;;  %v1635_v3 = vshra.s32 %v4475_v2, 12  ;;  %v1668_v15 = vcvt.s32.f32 %v1652_v6  ;;  %v1732_v21 = vmul.f32 %v1712_v7, %v1669_v12  ;;  %v4548_v51 = vld [vmem:[%s3762_s14 + $0x8] sm:$0xff]  ;;  %v2005_v22 = vshra.s32 %v4458_v45, 20 }
 0x170   : > { %3104 = vmatpush3.msra.mxu0 %v1363_v8  ;;  %v4480_v8 = vld [vmem:[%s3762_s14 + $0x60] sm:$0xff]  ;;  %v1661_v0 = vcvt.s32.f32 %v1645_v50  ;;  %v1643_v1 = vand.u32 15, %v1627_v60  ;;  %v1623_v12 = vshra.s32 %v4548_v51, 12 }
 0x171   : > { %3105 = vmatprep.subr.mxu0 %v3569_v53  ;;  %v1634_v9 = vshra.s32 %v4480_v8, 12  ;;  %v1731_v25 = vmul.f32 %v1712_v7, %v1668_v15 }
 0x172   : > { %3106 = vmatpush3.msra.mxu0 %v1362_v63  ;;  %v1651_v63 = vand.u32 15, %v1635_v3  ;;  %v2744_v3 = vld.sshfl [vmem:[%s3764_s3 + $0x14] sm:$0x33 pattern:$0x75316420] }
 0x173   : > { %3107 = vmatprep.subr.mxu0 %v3569_v53  ;;  %v1650_v16 = vand.u32 15, %v1634_v9  ;;  %v4543_v9 = vld [vmem:[%s3762_s14 + $0x10] sm:$0xff] }
 0x174   : > { %3108 = vmatpush3.msra.mxu0 %v1361_v14  ;;  %v1349_v14 = vmul.f32 %v1332_v40, %v1286_v58 }
 0x175   : > { %3109 = vmatprep.subr.mxu0 %v3569_v53 }
 0x176   : > { %3110 = vmatpush3.msra.mxu0 %v1360_v19  ;;  %v4499_v19 = vld [vmem:[%s3762_s14 + $0x48] sm:$0xff] }
 0x177   : > { %3111 = vmatprep.subr.mxu0 %v3569_v53  ;;  %v1631_v20 = vshra.s32 %v4499_v19, 12 }
 0x178   : > { %3112 = vmatpush3.msra.mxu0 %v1359_v10  ;;  %v1667_v10 = vcvt.s32.f32 %v1651_v63  ;;  %v1659_v63 = vcvt.s32.f32 %v1643_v1  ;;  %v1999_v1 = vshra.s32 %v4499_v19, 20 }
 0x179   : > { %3113 = vmatprep.subr.mxu0 %v3569_v53  ;;  %v1647_v29 = vand.u32 15, %v1631_v20  ;;  %v4553_v20 = vld [vmem:[%s3762_s14] sm:$0xff] }
 0x17a   : > { %3114 = vmatpush3.msra.mxu0 %v1358_v24  ;;  %v1666_v24 = vcvt.s32.f32 %v1650_v16  ;;  %v1722_v23 = vmul.f32 %v1704_v61, %v1659_v63  ;;  %v3454_v63 = vld [vmem:[%s3756_s1 + $0x18] sm:$0xff] }
 0x17b   : > { %3115 = vmatprep.subr.mxu0 %v3569_v53  ;;  %v1663_v42 = vcvt.s32.f32 %v1647_v29 }
 0x17c   : > { %3116 = vmatpush3.msra.mxu0 %v1357_v33  ;;  %v1730_v33 = vmul.f32 %v1712_v7, %v1667_v10  ;;  %v1639_v10 = vand.u32 15, %v1623_v12 }
 0x17d   : > { %3117 = vmatprep.subr.mxu0 %v3569_v53  ;;  %v1726_v59 = vmul.f32 %v1708_v34, %v1663_v42  ;;  %v2002_v42 = vshra.s32 %v4480_v8, 20 }
 0x17e   : > { %3118 = vmatpush3.msra.mxu0 %v1356_v39  ;;  %v1729_v39 = vmul.f32 %v1712_v7, %v1666_v24  ;;  %v1724_v7 = vmul.f32 %v1704_v61, %v1661_v0  ;;  %v1700_v24 = vrot.slane %v4490_v4, %v4181_v49  ;;  %v1655_v47 = vcvt.s32.f32 %v1639_v10 }
 0x17f   : > { %3119 = vmatprep.subr.mxu0 %v3569_v53  ;;  %v2018_v0 = vand.u32 15, %v2002_v42 }
 0x180   : > { %3120 = vmatpush3.msra.mxu0 %v1355_v43  ;;  %v1628_v43 = vshra.s32 %v4520_v41, 12 }
 0x181   : > { %3121 = vmatprep.subr.mxu0 %v3569_v53 }
 0x182   : > { %3122 = vmatpush3.msra.mxu0 %v1354_v54  ;;  %v1727_v54 = vmul.f32 %v1708_v34, %v1664_v26  ;;  %v1644_v40 = vand.u32 15, %v1628_v43 }
 0x183   : > { %3123 = vmatprep.subr.mxu0 %v3569_v53 }
 0x184   : > { %3124 = vmatpush3.msra.mxu0 %v1353_v52  ;;  %v4530_v52 = vld [vmem:[%s3762_s14 + $0x20] sm:$0xff]  ;;  %v1660_v58 = vcvt.s32.f32 %v1644_v40  ;;  %v4575_v40 = vrot.slane %v2744_v3, %v4175_v46 }
 0x185   : > { %3125 = vmatprep.subr.mxu0 %v3569_v53  ;;  %v1626_v38 = vshra.s32 %v4530_v52, 12 }
 0x186   : > { %3126 = vmatpush3.msra.mxu0 %v1352_v56  ;;  %v4537_v56 = vld [vmem:[%s3762_s14 + $0x18] sm:$0xff]  ;;  %v1723_v15 = vmul.f32 %v1704_v61, %v1660_v58  ;;  %s4760_s14 = scalar_lea.vmem (!%p2765_p6), %s4740_s5, %s3751_s8 }
 0x187   : > { %3127 = vmatprep.subr.mxu0 %v3569_v53  ;;  %v1625_v57 = vshra.s32 %v4537_v56, 12  ;;  %v1642_v6 = vand.u32 15, %v1626_v38  ;;  %v1993_v42 = vshra.s32 %v4537_v56, 20 }
 0x188   : > { %3128 = vmatpush3.msra.mxu0 %v1351_v5  ;;  %v1725_v5 = vmul.f32 %v1708_v34, %v1662_v55  ;;  %v2021_v34 = vand.u32 15, %v2005_v22  ;;  %v2001_v55 = vshra.s32 %v4486_v13, 20 }
 0x189   : > { %3129 = vmatprep.subr.mxu0 %v3569_v53  ;;  %v1641_v37 = vand.u32 15, %v1625_v57  ;;  %v1658_v16 = vcvt.s32.f32 %v1642_v6 }
 0x18a   : > { %3130 = vmatpush3.msra.mxu0 %v1350_v11  ;;  %v1624_v11 = vshra.s32 %v4543_v9, 12  ;;  %v2037_v50 = vcvt.s32.f32 %v2021_v34  ;;  %v2017_v58 = vand.u32 15, %v2001_v55  ;;  %v1992_v55 = vshra.s32 %v4543_v9, 20 }
 0x18b   : > { %3131 = vmatprep.subr.mxu0 %v3569_v53  ;;  %v1721_v32 = vmul.f32 %v1704_v61, %v1658_v16  ;;  %v2000_v61 = vshra.s32 %v4494_v18, 20 }
 0x18c   : > { %3132 = vmatpush3.msra.mxu0 %v1349_v14  ;;  %v2048_v14 = vcombine.high %v2744_v3, %v2744_v3  ;;  %v1640_v17 = vand.u32 15, %v1624_v11  ;;  %v2063_v3 = vcombine.high %v4575_v40, %v4575_v40  ;;  %v2034_v11 = vcvt.s32.f32 %v2018_v0 }
 0x18d   : > { %3134 = vmatmul.mubr.f32.vlgmr.msra.gmra.mxu0 %v3445_v30  ;;  %3171 = vmatprep.subr.mxu0 %v3569_v53  ;;  %v2016_v12 = vand.u32 15, %v2000_v61 }
 0x18e   : > { %3172 = vmatpush3.msra.mxu0 %v1732_v21  ;;  %3203 = vmatprep.mubr.msk.f32.mxu0 %vm3570_vm0, %v3569_v53  ;;  %v1622_v21 = vshra.s32 %v4553_v20, 12  ;;  %v4561_v27 = vrot.slane %v2048_v14, %v4175_v46  ;;  %v1656_v30 = vcvt.s32.f32 %v1640_v17  ;;  %v2076_v16 = vrot.slane %v2063_v3, %v4181_v49 }
 0x18f   : > { %3173 = vmatprep.subr.mxu0 %v3569_v53  ;;  %v1997_v17 = vshra.s32 %v4513_v35, 20  ;;  %v2032_v10 = vcvt.s32.f32 %v2016_v12  ;;  %v2068_v12 = vrot.slane %v4575_v40, %v4181_v49 }
 0x190   : > { %3174 = vmatpush3.msra.mxu0 %v1731_v25  ;;  %v1657_v25 = vcvt.s32.f32 %v1641_v37  ;;  %v1638_v29 = vand.u32 15, %v1622_v21  ;;  %v2064_v4 = vcombine.high %v4561_v27, %v4561_v27  ;;  %v1719_v26 = vmul.f32 %v1700_v24, %v1656_v30 }
 0x191   : > { %3175 = vmatprep.subr.mxu0 %v3569_v53  ;;  %v2015_v37 = vand.u32 15, %v1999_v1  ;;  %v2013_v30 = vand.u32 15, %v1997_v17  ;;  %v2762_v17 = vshrl.u32 %v4458_v45, 28 }
 0x192   : > { %3176 = vmatpush3.msra.mxu0 %v1730_v33  ;;  %v2004_v33 = vshra.s32 %v4468_v62, 20  ;;  %v1720_v36 = vmul.f32 %v1700_v24, %v1657_v25  ;;  %v1654_v31 = vcvt.s32.f32 %v1638_v29  ;;  %v2080_v60 = vrot.slane %v2064_v4, %v4181_v49  ;;  %v4593_v25 = vpop.f32.mrf.mxu1 }
 0x193   : > { %3177 = vmatprep.subr.mxu0 %v3569_v53  ;;  %v1995_v29 = vshra.s32 %v4525_v48, 20  ;;  %v1994_v4 = vshra.s32 %v4530_v52, 20 }
 0x194   : > { %3178 = vmatpush3.msra.mxu0 %v1729_v39  ;;  %v2003_v39 = vshra.s32 %v4475_v2, 20  ;;  %v2020_v43 = vand.u32 15, %v2004_v33  ;;  %v1717_v38 = vmul.f32 %v1700_v24, %v1654_v31  ;;  %v2100_v57 = vmul.f32 %v2080_v60, %v2037_v50  ;;  %v3100_v33 = vpop.f32.mrf.mxu1 }
 0x195   : > { %3179 = vmatprep.subr.mxu0 %v3569_v53  ;;  %v2097_v21 = vmul.f32 %v2080_v60, %v2034_v11  ;;  %v2072_v31 = vrot.slane %v4561_v27, %v4181_v49  ;;  %v2009_v27 = vand.u32 15, %v1993_v42 }
 0x196   : > { %3180 = vmatpush3.msra.mxu0 %v1728_v44  ;;  %v1718_v44 = vmul.f32 %v1700_v24, %v1655_v47  ;;  %v2031_v24 = vcvt.s32.f32 %v2015_v37  ;;  %v2095_v47 = vmul.f32 %v2076_v16, %v2032_v10 }
 0x197   : > { %3181 = vmatprep.subr.mxu0 %v3569_v53  ;;  %v2025_v11 = vcvt.s32.f32 %v2009_v27  ;;  %v2752_v27 = vshrl.u32 %v4525_v48, 28 }
 0x198   : > { %3182 = vmatpush3.msra.mxu0 %v1727_v54  ;;  %v2019_v54 = vand.u32 15, %v2003_v39  ;;  %v2094_v39 = vmul.f32 %v2076_v16, %v2031_v24  ;;  %v2405_v24 = vcvt.s32.f32 %v2762_v17 }
 0x199   : > { %3183 = vmatprep.subr.mxu0 %v3569_v53 }
 0x19a   : > { %3184 = vmatpush3.msra.mxu0 %v1726_v59  ;;  %v2036_v59 = vcvt.s32.f32 %v2020_v43  ;;  %v2011_v43 = vand.u32 15, %v1995_v29 }
 0x19b   : > { %3185 = vmatprep.subr.mxu0 %v3569_v53 }
 0x19c   : > { %3186 = vmatpush3.msra.mxu0 %v1725_v5  ;;  %v2035_v5 = vcvt.s32.f32 %v2019_v54  ;;  %v2099_v6 = vmul.f32 %v2080_v60, %v2036_v59  ;;  %v2010_v54 = vand.u32 15, %v1994_v4  ;;  %v2027_v0 = vcvt.s32.f32 %v2011_v43 }
 0x19d   : > { %3187 = vmatprep.subr.mxu0 %v3569_v53 }
 0x19e   : > { %3188 = vmatpush3.msra.mxu0 %v1724_v7  ;;  %v1998_v7 = vshra.s32 %v4506_v28, 20  ;;  %v2098_v14 = vmul.f32 %v2080_v60, %v2035_v5  ;;  %v2008_v5 = vand.u32 15, %v1992_v55 }
 0x19f   : > { %3189 = vmatprep.subr.mxu0 %v3569_v53 }
 0x1a0   : > { %3190 = vmatpush3.msra.mxu0 %v1723_v15  ;;  %v2033_v15 = vcvt.s32.f32 %v2017_v58  ;;  %v2014_v22 = vand.u32 15, %v1998_v7  ;;  %v1990_v58 = vshra.s32 %v4553_v20, 20  ;;  %v2024_v37 = vcvt.s32.f32 %v2008_v5 }
 0x1a1   : > { %3191 = vmatprep.subr.mxu0 %v3569_v53  ;;  %v2395_v5 = vcvt.s32.f32 %v2752_v27 }
 0x1a2   : > { %3192 = vmatpush3.msra.mxu0 %v1722_v23  ;;  %v1996_v23 = vshra.s32 %v4520_v41, 20  ;;  %v2030_v34 = vcvt.s32.f32 %v2014_v22  ;;  %v2087_v40 = vmul.f32 %v2068_v12, %v2024_v37  ;;  %v2761_v22 = vshrl.u32 %v4468_v62, 28 }
 0x1a3   : > { %3193 = vmatprep.subr.mxu0 %v3569_v53  ;;  %v2759_v62 = vshrl.u32 %v4480_v8, 28 }
 0x1a4   : > { %3194 = vmatpush3.msra.mxu0 %v1721_v32  ;;  %v2096_v32 = vmul.f32 %v2076_v16, %v2033_v15  ;;  %v2093_v50 = vmul.f32 %v2076_v16, %v2030_v34  ;;  %v2088_v16 = vmul.f32 %v2068_v12, %v2025_v11  ;;  %v2404_v33 = vcvt.s32.f32 %v2761_v22 }
 0x1a5   : > { %3195 = vmatprep.subr.mxu0 %v3569_v53  ;;  %v2402_v4 = vcvt.s32.f32 %v2759_v62  ;;  %v2749_v11 = vshrl.u32 %v4543_v9, 28 }
 0x1a6   : > { %3196 = vmatpush3.msra.mxu0 %v1720_v36  ;;  %v2012_v36 = vand.u32 15, %v1996_v23 }
 0x1a7   : > { %3197 = vmatprep.subr.mxu0 %v3569_v53  ;;  %v2392_v37 = vcvt.s32.f32 %v2749_v11 }
 0x1a8   : > { %3198 = vmatpush3.msra.mxu0 %v1719_v26  ;;  %v2029_v26 = vcvt.s32.f32 %v2013_v30  ;;  %v2028_v60 = vcvt.s32.f32 %v2012_v36  ;;  %v2760_v30 = vshrl.u32 %v4475_v2, 28  ;;  %v2758_v36 = vshrl.u32 %v4486_v13, 28 }
 0x1a9   : > { %3199 = vmatprep.subr.mxu0 %v3569_v53  ;;  %v2756_v13 = vshrl.u32 %v4499_v19, 28 }
 0x1aa   : > { %3200 = vmatpush3.msra.mxu0 %v1718_v44  ;;  %v2764_v44 = vld.sshfl [vmem:[%s3764_s3 + $0x1c] sm:$0x33 pattern:$0x75316420]  ;;  %v2092_v59 = vmul.f32 %v2072_v31, %v2029_v26  ;;  %v2091_v1 = vmul.f32 %v2072_v31, %v2028_v60  ;;  %v2403_v34 = vcvt.s32.f32 %v2760_v30  ;;  %v3455_v26 = vld [vmem:[%s3756_s1 + $0x28] sm:$0xff] }
 0x1ab   : > { %3201 = vmatprep.subr.mxu0 %v3569_v53  ;;  %v2416_v61 = vcombine.high %v2764_v44, %v2764_v44  ;;  %v4627_v45 = vrot.slane %v2764_v44, %v4175_v46  ;;  %v2399_v60 = vcvt.s32.f32 %v2756_v13 }
 0x1ac   : > { %3202 = vmatpush3.msra.mxu0 %v1717_v38  ;;  %v1991_v38 = vshra.s32 %v4548_v51, 20 }
 0x1ad   : > { %3204 = vmatmul.mubr.f32.vlgmr.msra.gmra.mxu0 %v3454_v63  ;;  %3241 = vmatprep.subr.mxu0 %v3569_v53  ;;  %v4614_v7 = vrot.slane %v2416_v61, %v4175_v46  ;;  %v2431_v2 = vcombine.high %v4627_v45, %v4627_v45 }
 0x1ae   : > { %3242 = vmatpush3.msra.mxu0 %v2100_v57  ;;  %3273 = vmatprep.mubr.msk.f32.mxu0 %vm3570_vm0, %v3569_v53  ;;  %v2026_v57 = vcvt.s32.f32 %v2010_v54  ;;  %v2007_v3 = vand.u32 15, %v1991_v38  ;;  %v2754_v54 = vshrl.u32 %v4513_v35, 28  ;;  %v2753_v38 = vshrl.u32 %v4520_v41, 28 }
 0x1af   : > { %3243 = vmatprep.subr.mxu0 %v3569_v53  ;;  %v2444_v43 = vrot.slane %v2431_v2, %v4181_v49 }
 0x1b0   : > { %3244 = vmatpush3.msra.mxu0 %v2099_v6  ;;  %v2090_v6 = vmul.f32 %v2072_v31, %v2027_v0  ;;  %v2089_v63 = vmul.f32 %v2072_v31, %v2026_v57  ;;  %v2023_v15 = vcvt.s32.f32 %v2007_v3  ;;  %v2401_v31 = vcvt.s32.f32 %v2758_v36  ;;  %v1616_v57 = vpop.f32.mrf.mxu1 }
 0x1b1   : > { %3245 = vmatprep.subr.mxu0 %v3569_v53  ;;  %v2397_v0 = vcvt.s32.f32 %v2754_v54  ;;  %v2396_v61 = vcvt.s32.f32 %v2753_v38 }
 0x1b2   : > { %3246 = vmatpush3.msra.mxu0 %v2098_v14  ;;  %v2006_v14 = vand.u32 15, %v1990_v58  ;;  %v2086_v23 = vmul.f32 %v2068_v12, %v2023_v15  ;;  %v2750_v58 = vshrl.u32 %v4537_v56, 28  ;;  %v3170_v3 = vpop.f32.mrf.mxu1 }
 0x1b3   : > { %3247 = vmatprep.subr.mxu0 %v3569_v53 }
 0x1b4   : > { %3248 = vmatpush3.msra.mxu0 %v2097_v21  ;;  %v2432_v21 = vcombine.high %v4614_v7, %v4614_v7  ;;  %v2022_v10 = vcvt.s32.f32 %v2006_v14  ;;  %v2747_v14 = vshrl.u32 %v4553_v20, 28  ;;  %v3456_v20 = vld [vmem:[%s3756_s1 + $0x38] sm:$0xff]  ;;  %s4761_s1 = scalar_lea.vmem (!%p2765_p6), [#allocation6], %s3746_s10 }
 0x1b5   : > { %3249 = vmatprep.subr.mxu0 %v3569_v53 }
 0x1b6   : > { %3250 = vmatpush3.msra.mxu0 %v2096_v32  ;;  %v2448_v32 = vrot.slane %v2432_v21, %v4181_v49  ;;  %v2085_v29 = vmul.f32 %v2068_v12, %v2022_v10  ;;  %v2393_v12 = vcvt.s32.f32 %v2750_v58 }
 0x1b7   : > { %3251 = vmatprep.subr.mxu0 %v3569_v53 }
 0x1b8   : > { %3252 = vmatpush3.msra.mxu0 %v2095_v47  ;;  %v2468_v47 = vmul.f32 %v2448_v32, %v2405_v24  ;;  %v2467_v46 = vmul.f32 %v2448_v32, %v2404_v33  ;;  %v2466_v8 = vmul.f32 %v2448_v32, %v2403_v34  ;;  %v2465_v42 = vmul.f32 %v2448_v32, %v2402_v4  ;;  %v990_v32 = vld [vmem:[#allocation2] sm:$0xff] }
 0x1b9   : > { %3253 = vmatprep.subr.mxu0 %v3569_v53 }
 0x1ba   : > { %3254 = vmatpush3.msra.mxu0 %v2094_v39  ;;  %v2757_v39 = vshrl.u32 %v4494_v18, 28  ;;  %v2755_v18 = vshrl.u32 %v4506_v28, 28  ;;  %v2440_v28 = vrot.slane %v4614_v7, %v4181_v49  ;;  %v2436_v7 = vrot.slane %v4627_v45, %v4181_v49 }
 0x1bb   : > { %3255 = vmatprep.subr.mxu0 %v3569_v53  ;;  %v2390_v49 = vcvt.s32.f32 %v2747_v14 }
 0x1bc   : > { %3256 = vmatpush3.msra.mxu0 %v2093_v50  ;;  %v2400_v44 = vcvt.s32.f32 %v2757_v39  ;;  %v2464_v50 = vmul.f32 %v2444_v43, %v2401_v31  ;;  %v2398_v55 = vcvt.s32.f32 %v2755_v18  ;;  %v2460_v41 = vmul.f32 %v2440_v28, %v2397_v0 }
 0x1bd   : > { %3257 = vmatprep.subr.mxu0 %v3569_v53  ;;  %v2459_v48 = vmul.f32 %v2440_v28, %v2396_v61  ;;  %v2456_v9 = vmul.f32 %v2436_v7, %v2393_v12  ;;  %v2453_v17 = vmul.f32 %v2436_v7, %v2390_v49 }
 0x1be   : > { %3258 = vmatpush3.msra.mxu0 %v2092_v59  ;;  %v2463_v19 = vmul.f32 %v2444_v43, %v2400_v44  ;;  %v2462_v59 = vmul.f32 %v2444_v43, %v2399_v60  ;;  %v2461_v35 = vmul.f32 %v2444_v43, %v2398_v55 }
 0x1bf   : > { %3259 = vmatprep.subr.mxu0 %v3569_v53 }
 0x1c0   : > { %3260 = vmatpush3.msra.mxu0 %v2091_v1  ;;  %v2751_v1 = vshrl.u32 %v4530_v52, 28  ;;  %v2458_v52 = vmul.f32 %v2440_v28, %v2395_v5 }
 0x1c1   : > { %3261 = vmatprep.subr.mxu0 %v3569_v53 }
 0x1c2   : > { %3262 = vmatpush3.msra.mxu0 %v2090_v6  ;;  %v2394_v6 = vcvt.s32.f32 %v2751_v1 }
 0x1c3   : > { %3263 = vmatprep.subr.mxu0 %v3569_v53 }
 0x1c4   : > { %3264 = vmatpush3.msra.mxu0 %v2089_v63  ;;  %v2748_v63 = vshrl.u32 %v4548_v51, 28  ;;  %v2457_v56 = vmul.f32 %v2440_v28, %v2394_v6 }
 0x1c5   : > { %3265 = vmatprep.subr.mxu0 %v3569_v53  ;;  %v1984_v21 = vpop.f32.mrf.mxu1 }
 0x1c6   : > { %3266 = vmatpush3.msra.mxu0 %v2088_v16  ;;  %v2391_v15 = vcvt.s32.f32 %v2748_v63  ;;  %v2455_v16 = vmul.f32 %v2436_v7, %v2392_v37 }
 0x1c7   : > { %3267 = vmatprep.subr.mxu0 %v3569_v53 }
 0x1c8   : > { %3268 = vmatpush3.msra.mxu0 %v2087_v40  ;;  %v2454_v51 = vmul.f32 %v2436_v7, %v2391_v15  ;;  %v3240_v40 = vpop.f32.mrf.mxu1 }
 0x1c9   : > { %3269 = vmatprep.subr.mxu0 %v3569_v53 }
 0x1ca   : > { %3270 = vmatpush3.msra.mxu0 %v2086_v23 }
 0x1cb   : > { %3271 = vmatprep.subr.mxu0 %v3569_v53 }
 0x1cc   : > { %3272 = vmatpush3.msra.mxu0 %v2085_v29 }
 0x1cd   : > { %3274 = vmatmul.mubr.f32.vlgmr.msra.gmra.mxu0 %v3455_v26  ;;  %3311 = vmatprep.subr.mxu0 %v3569_v53 }
 0x1ce   : > { %3312 = vmatpush3.msra.mxu0 %v2468_v47  ;;  %3343 = vmatprep.mubr.msk.f32.mxu0 %vm3570_vm0, %v3569_v53 }
 0x1cf   : > { %3313 = vmatprep.subr.mxu0 %v3569_v53 }
 0x1d0   : > { %3314 = vmatpush3.msra.mxu0 %v2467_v46 }
 0x1d1   : > { %3315 = vmatprep.subr.mxu0 %v3569_v53 }
 0x1d2   : > { %3316 = vmatpush3.msra.mxu0 %v2466_v8 }
 0x1d3   : > { %3317 = vmatprep.subr.mxu0 %v3569_v53 }
 0x1d4   : > { %3318 = vmatpush3.msra.mxu0 %v2465_v42 }
 0x1d5   : > { %3319 = vmatprep.subr.mxu0 %v3569_v53 }
 0x1d6   : > { %3320 = vmatpush3.msra.mxu0 %v2464_v50 }
 0x1d7   : > { %3321 = vmatprep.subr.mxu0 %v3569_v53 }
 0x1d8   : > { %3322 = vmatpush3.msra.mxu0 %v2463_v19 }
 0x1d9   : > { %3323 = vmatprep.subr.mxu0 %v3569_v53 }
 0x1da   : > { %3324 = vmatpush3.msra.mxu0 %v2462_v59 }
 0x1db   : > { %3325 = vmatprep.subr.mxu0 %v3569_v53 }
 0x1dc   : > { %3326 = vmatpush3.msra.mxu0 %v2461_v35 }
 0x1dd   : > { %3327 = vmatprep.subr.mxu0 %v3569_v53 }
 0x1de   : > { %3328 = vmatpush3.msra.mxu0 %v2460_v41 }
 0x1df   : > { %3329 = vmatprep.subr.mxu0 %v3569_v53 }
 0x1e0   : > { %3330 = vmatpush3.msra.mxu0 %v2459_v48 }
 0x1e1   : > { %3331 = vmatprep.subr.mxu0 %v3569_v53 }
 0x1e2   : > { %3332 = vmatpush3.msra.mxu0 %v2458_v52 }
 0x1e3   : > { %3333 = vmatprep.subr.mxu0 %v3569_v53 }
 0x1e4   : > { %3334 = vmatpush3.msra.mxu0 %v2457_v56 }
 0x1e5   : > { %3335 = vmatprep.subr.mxu0 %v3569_v53  ;;  %v2352_v10 = vpop.f32.mrf.mxu1 }
 0x1e6   : > { %3336 = vmatpush3.msra.mxu0 %v2456_v9 }
 0x1e7   : > { %3337 = vmatprep.subr.mxu0 %v3569_v53  ;;  %v3310_v22 = vpop.f32.mrf.mxu1 }
 0x1e8   : > { %3338 = vmatpush3.msra.mxu0 %v2455_v16 }
 0x1e9   : > { %3339 = vmatprep.subr.mxu0 %v3569_v53 }
 0x1ea   : > { %3340 = vmatpush3.msra.mxu0 %v2454_v51 }
 0x1eb   : > { %3341 = vmatprep.subr.mxu0 %v3569_v53 }
 0x1ec   : > { %3342 = vmatpush3.msra.mxu0 %v2453_v17 }
 0x1ed   : > { %3344 = vmatmul.mubr.f32.vlgmr.msra.gmra.mxu0 %v3456_v20 }
 0x22d   : > { %v1065_v23 = vpop.f32.mrf.mxu0 }
 0x22e   : > { %v1069_v30 = vadd.f32 %v1065_v23, %v990_v32 }
 0x22f   : > { %v3065_v24 = vpop.f32.mrf.mxu0 }
 0x230   : > { %v1252_v45 = vadd.f32 %v4593_v25, %v1069_v30 }
 0x24d   : > { %v1432_v29 = vpop.f32.mrf.mxu0 }
 0x24e   : > { %v1436_v33 = vadd.f32 %v1432_v29, %v1252_v45 }
 0x24f   : > { %v3135_v62 = vpop.f32.mrf.mxu0 }
 0x250   : > { %v1620_v2 = vadd.f32 %v1616_v57, %v1436_v33 }
 0x26d   : > { %v1800_v47 = vpop.f32.mrf.mxu0 }
 0x26e   : > { %v1804_v46 = vadd.f32 %v1800_v47, %v1620_v2 }
 0x26f   : > { %v3205_v34 = vpop.f32.mrf.mxu0 }
 0x270   : > { %v1988_v4 = vadd.f32 %v1984_v21, %v1804_v46 }
 0x28d   : > { %v2168_v36 = vpop.f32.mrf.mxu0 }
 0x28e   : > { %v2172_v39 = vadd.f32 %v2168_v36, %v1988_v4 }
 0x28f   : > { %v3275_v53 = vpop.f32.mrf.mxu0 }
 0x290   : > { %v2356_v26 = vadd.f32 %v2352_v10, %v2172_v39 }
 0x2ac   : > { %2545 = sbr.rel (%p2765_p6) target bundleno = 699 (0x2bb), region = 169 }
 0x2ad   : > { %v2536_v8 = vpop.f32.mrf.mxu0 }
 0x2ae   : > { %v2540_v31 = vadd.f32 %v2536_v8, %v2356_v26 }
 0x2af   : > { %v3345_v43 = vpop.f32.mrf.mxu0 }
 0x2b0   : > { %2541 = vst [vmem:[#allocation2] sm:$0xff] %v2540_v31 }
 0x2b1   : > { %v2766_v13 = vld [vmem:[%s4760_s14] ss:$0 sm:$0xff] }
 0x2b7   : > { %v2546_v25 = vld [vmem:[#allocation2] sm:$0xff] }
 0x2b8   : > { %v2554_v42 = vadd.f32 %v2766_v13, %v2546_v25 }
 0x2ba   : > { %2555 = vst [vmem:[%s4761_s1] sm:$0xff] %v2554_v42 }
 0x2bb PF: > { %s2768_s9 = sshll.u32 %s3553_s27, 7  ;;  %s4762_s13 = scalar_lea.vmem [#allocation6], %s3746_s10 }
 0x2bc   : > { %s2568_s28 = scalar_lea.hbm %s4741_s6, %s2768_s9  ;;  %s2570_s7 = sshll.u32 %s4762_s13, 4  ;;  %s2571_s7 = int_to_ptr.vmem [resolvable:$true] %s2570_s7 }
 0x2bd   : > { %s4763_s12 = sand.u32 1, %s3533_s22   ;;  %s3457_s16 = scalar_lea.vmem %s2571_s7, 128 }
 0x2be   : > { %s2557_s8 = scalar_lea.sflag [#allocation7], %s4763_s12  ;;  %p3458_p8 = scmp.ne.s32.totalorder %s2571_s7, %s3457_s16 }
 0x2bf   : > { %s3571_s2 = smov [#allocation6]  }
 0x2c0   : > { %p3459_p9 = pnand %p3458_p8, %p3679_p7  ;;  %s3461_s11 = sshll.u32 %s3571_s2, 4  ;;  %s3462_s11 = int_to_ptr.vmem [resolvable:$false] %s3461_s11 }
 0x2c1   : > { %s3463_s17 = scalar_lea.vmem %s3462_s11, 256  ;;  %p3464_p11 = scmp.lt.s32.totalorder %s2571_s7, %s3462_s11 }
 0x2c2   : > { %p3460_p10 = pneg %p3459_p9  ;;  %p3465_p13 = scmp.lt.s32.totalorder %s3463_s17, %s3457_s16 }
 0x2c4   : > { %p3466_p0 = por %p3465_p13, %p3464_p11 }
 0x2c6   : > { %p3467_p1 = pnand %p3466_p0, %p3460_p10 }
 0x2c8   : > { %3470 = shalt.err (!%p3467_p1)
}
 0x2c9   : > { %s3471_s27 = scalar_lea.hbm %s2568_s28, 128  ;;  %s3475_s29 = scalar_lea.hbm %s4741_s6, 256 }
 0x2ca   : > { %p3472_p2 = scmp.ne.s32.totalorder %s2568_s28, %s3471_s27  ;;  %p3476_p5 = scmp.lt.s32.totalorder %s2568_s28, %s4741_s6 }
 0x2cb   : > { %p3477_p6 = scmp.lt.s32.totalorder %s3475_s29, %s3471_s27 }
 0x2cc   : > { %p3473_p3 = pnand %p3472_p2, %p3679_p7 }
 0x2cd   : > { %p3478_p8 = por %p3477_p6, %p3476_p5 }
 0x2ce   : > { %p3474_p4 = pneg %p3473_p3 }
 0x2d0   : > { %p3479_p9 = pnand %p3478_p8, %p3474_p4 }
 0x2d2   : > { %3482 = shalt.err (!%p3479_p9)
}
 0x2d3   : > { %3346 = dma.vmem_to_hbm [thread:$0]  (%p3679_p7), %s2571_s7, 128, %s2568_s28, %s2557_s8  }
 0x2d4 PF: > { %p3352_p10 = scmp.ge.s32.totalorder %s3565_s30, 2  ;;  %s2582_s9 = sand.u32 1, %s3529_s21  }
 0x2d5   : > { %s2583_s24 = scalar_lea.sflag [#allocation7], %s2582_s9 }
 0x2d6   : > { %p3349_p11 = pnand %p3352_p10, %p3687_p12 }
 0x2d8   : > { %p3350_p13 = pneg %p3349_p11 }
 0x2da   : > { %3524 = dma.done.wait (%p3350_p13), %s2583_s24, 128  }
 0x2db   : > { %3526 = vsyncadd (%p3350_p13), %s2583_s24, 4294967168  ;;  %s19_s30 = sadd.s32 1, %s3565_s30   ;;  %s4764_s26 = sld [smem:[#allocation9_spill]] }
 0x2dc   : > { %p16_p0 = scmp.ge.s32.totalorder %s19_s30, 6   ;;  %s4765_s27 = sld [smem:[#allocation10_spill]] }
 0x2dd   : > { %s4766_s28 = sld [smem:[#allocation11_spill]]  ;;  %s4768_s21 = smov %s3533_s22 }
 0x2de   : > { %s4767_s29 = sld [smem:[#allocation12_spill]]  ;;  %s4769_s22 = smov %s3537_s23 }
 0x2df   : > { %s4770_s23 = smov %s3692_s19  ;;  %s4771_s24 = smov %s3545_s25 }
 0x2e0   : > { %s4772_s25 = smov %s3695_s20  ;;  %18 = sbr.rel (!%p16_p0) target bundleno = 10 (0xa), region = 238 }
 0x2e5   :  { %2588 = vsyncpa [#allocation7], 1 }
 0x2e6   :  { %2590 = vsyncpa [#allocation7 + $0x1], 1 }

</bundles_post_ra>
